<compile_context>
chip_gen: v7x
topology: tpu7x:2x2x1
jax: 0.10.0
libtpu: 0.0.40
codegen_flags: <defaults>
</compile_context>

<pallas_src>
import functools

import jax
import jax.numpy as jnp
from jax.experimental import pallas as pl
from jax.experimental.pallas import tpu as pltpu

# ----------------------------- hyperparameters ------------------------------
WORD_SIZE = 50      # parameter['word_size']   (small synthetic vocab)
EMBED_DIM = 32      # parameter['embedding_dim'] (scaled down from 256)
HID_DIM = 32        # parameter['hid_dim']       (scaled down from 128)
N_LAYERS = 2        # parameter['n_layers']
OUTPUT_SIZE = 5     # parameter['output_size']
BATCH = 2
SEQ = 8
BATCH_PAD = 8       # pad batch to one full f32 sublane tile


# ------------------------------- Pallas kernel ------------------------------
def _bilstm_fused_kernel(tok_ref, emb_ref,
                         w0_ih_ref, w0_blk_ref, b0_ref,
                         w1_ih_ref, w1_hh_ref, b1_ref,
                         wfc_ref, bfc_ref,
                         out_ref, x_scr, *, T, B, Bp):
    """Fused embedding + 2-layer biLSTM + last-step FC.

    tok_ref:   (B, T)     int32 tokens, scalar-prefetched into SMEM
    emb_ref:   (W, E)     embedding table (row 0 is the zero padding row)
    w0_ih_ref: (E, 8H)    layer-0 W_ih^T, fwd|bwd gates concatenated
    w0_blk_ref:(2H, 8H)   layer-0 block-diagonal recurrent weight blockdiag(W_f^T, W_b^T)
    b0_ref:    (1, 8H)    layer-0 (b_ih + b_hh), fwd|bwd concatenated
    w1_ih_ref: (2H, 8H)   layer-1 W_ih^T, fwd|bwd gates concatenated
    w1_hh_ref: (H, 4H)    layer-1 forward recurrent weights
    b1_ref:    (1, 8H)
    wfc_ref:   (2H, O)    FC weights
    bfc_ref:   (1, O)
    out_ref:   (B, O)
    x_scr:     (T*Bp, E)  VMEM scratch for the gathered, batch-padded input
    """
    H = w1_hh_ref.shape[0]
    G = 4 * H

    def cell(gates, c):
        # whole-width sigmoid / tanh (EUP), then lane slices (PyTorch gate order i,f,g,o)
        sg = jax.nn.sigmoid(gates)
        th = jnp.tanh(gates)
        i = sg[:, 0 * H:1 * H]
        f = sg[:, 1 * H:2 * H]
        g = th[:, 2 * H:3 * H]
        o = sg[:, 3 * H:4 * H]
        c_new = f * c + i * g
        return o * jnp.tanh(c_new), c_new

    # ---- fused embedding gather: tokens (SMEM) -> time-major, batch-padded x ----
    x_scr[...] = jnp.zeros_like(x_scr)            # padded rows stay exactly zero
    for t in range(T):
        for b in range(B):
            tok = tok_ref[b, t]                                  # SMEM scalar
            x_scr[pl.ds(t * Bp + b, 1), :] = emb_ref[pl.ds(tok, 1), :]

    # ---- layer 0: hoisted input projection for both directions (8H lanes) ----
    gin0 = (jnp.dot(x_scr[...], w0_ih_ref[...], preferred_element_type=jnp.float32)
            + b0_ref[...])                                       # (T*Bp, 8H)

    w0_blk = w0_blk_ref[...]                                     # (2H, 8H)
    zeros = jnp.zeros((Bp, H), jnp.float32)
    h2 = jnp.zeros((Bp, 2 * H), jnp.float32)                     # [h_fwd | h_bwd]
    cf, cb = zeros, zeros
    hf_seq = [None] * T
    hb_seq = [None] * T
    # fully unrolled recurrence; one block-diagonal MXU op serves both directions
    for t in range(T):
        tb = T - 1 - t                                           # backward time index
        rec = jnp.dot(h2, w0_blk, preferred_element_type=jnp.float32)   # (Bp, 8H)
        hf, cf = cell(gin0[t * Bp:(t + 1) * Bp, 0:G] + rec[:, 0:G], cf)
        hb, cb = cell(gin0[tb * Bp:(tb + 1) * Bp, G:2 * G] + rec[:, G:2 * G], cb)
        h2 = jnp.concatenate([hf, hb], axis=1)
        hf_seq[t] = hf
        hb_seq[tb] = hb                                          # time-aligned storage

    # ---- layer 1: one stacked input projection for all T steps & both directions ----
    l0_out = jnp.concatenate(
        [jnp.concatenate(hf_seq, axis=0), jnp.concatenate(hb_seq, axis=0)],
        axis=1)                                                  # (T*Bp, 2H)
    g1 = (jnp.dot(l0_out, w1_ih_ref[...], preferred_element_type=jnp.float32)
          + b1_ref[...])                                         # (T*Bp, 8H)

    # forward recurrence: only the final hidden state is needed
    w1_hh = w1_hh_ref[...]
    hf1, cf1 = zeros, zeros
    for t in range(T):
        gates = (g1[t * Bp:(t + 1) * Bp, 0:G]
                 + jnp.dot(hf1, w1_hh, preferred_element_type=jnp.float32))
        hf1, cf1 = cell(gates, cf1)

    # backward hidden at the last original time step == backward direction's FIRST
    # step from the zero initial state: no recurrence / recurrent matmul needed.
    hb1, _ = cell(g1[(T - 1) * Bp:T * Bp, G:2 * G], zeros)

    # ---- fused FC on the last-step (fwd, bwd) hidden states; drop batch padding ----
    h_last = jnp.concatenate([hf1, hb1], axis=1)                 # (Bp, 2H)
    logits = (jnp.dot(h_last, wfc_ref[...], preferred_element_type=jnp.float32)
              + bfc_ref[...])                                    # (Bp, O)
    out_ref[...] = logits[0:B, :]


# ------------------------------- wrapper -------------------------------------
def _fused_bilstm_call(tokens, embedding, kernel_weights):
    B, T = tokens.shape
    W, E = embedding.shape
    H = HID_DIM
    G = 4 * H
    O = OUTPUT_SIZE
    Bp = BATCH_PAD

    kernel = functools.partial(_bilstm_fused_kernel, T=T, B=B, Bp=Bp)
    return pl.pallas_call(
        kernel,
        out_shape=jax.ShapeDtypeStruct((B, O), jnp.float32),
        grid_spec=pltpu.PrefetchScalarGridSpec(
            num_scalar_prefetch=1,                               # tokens -> SMEM
            grid=(1,),
            in_specs=[
                pl.BlockSpec((W, E), lambda i, tok: (0, 0)),         # embedding table
                pl.BlockSpec((E, 2 * G), lambda i, tok: (0, 0)),     # w0_ih
                pl.BlockSpec((2 * H, 2 * G), lambda i, tok: (0, 0)),  # w0_blk (block-diag)
                pl.BlockSpec((1, 2 * G), lambda i, tok: (0, 0)),     # b0
                pl.BlockSpec((2 * H, 2 * G), lambda i, tok: (0, 0)),  # w1_ih
                pl.BlockSpec((H, G), lambda i, tok: (0, 0)),         # w1_hh (fwd)
                pl.BlockSpec((1, 2 * G), lambda i, tok: (0, 0)),     # b1
                pl.BlockSpec((2 * H, O), lambda i, tok: (0, 0)),     # wfc
                pl.BlockSpec((1, O), lambda i, tok: (0, 0)),         # bfc
            ],
            out_specs=pl.BlockSpec((B, O), lambda i, tok: (0, 0)),
            scratch_shapes=[pltpu.VMEM((T * Bp, E), jnp.float32)],
        ),
        compiler_params=pltpu.CompilerParams(
            dimension_semantics=("arbitrary",)),
    )(tokens, embedding, *kernel_weights)


# ----------------------------- parameter init --------------------------------
def init_params(key):
    params = {}
    k_emb, k_rest = jax.random.split(key)

    # nn.Embedding(word_size, embedding_dim, padding_idx=0): N(0,1), row 0 zeroed
    emb = jax.random.normal(k_emb, (WORD_SIZE, EMBED_DIM), jnp.float32)
    emb = emb.at[0].set(0.0)
    params["embedding"] = emb

    # nn.LSTM(E, H, 2, bidirectional=True): uniform(-1/sqrt(H), 1/sqrt(H))
    k_lstm = 1.0 / jnp.sqrt(jnp.float32(HID_DIM))
    keys = jax.random.split(k_rest, N_LAYERS * 2 * 4 + 2)
    ki = 0
    for layer in range(N_LAYERS):
        d_in = EMBED_DIM if layer == 0 else 2 * HID_DIM
        for direction in ("fwd", "bwd"):
            w_ih = jax.random.uniform(keys[ki], (4 * HID_DIM, d_in),
                                      jnp.float32, -k_lstm, k_lstm); ki += 1
            w_hh = jax.random.uniform(keys[ki], (4 * HID_DIM, HID_DIM),
                                      jnp.float32, -k_lstm, k_lstm); ki += 1
            b_ih = jax.random.uniform(keys[ki], (4 * HID_DIM,),
                                      jnp.float32, -k_lstm, k_lstm); ki += 1
            b_hh = jax.random.uniform(keys[ki], (4 * HID_DIM,),
                                      jnp.float32, -k_lstm, k_lstm); ki += 1
            params[f"l{layer}_{direction}"] = (w_ih, w_hh, b_ih, b_hh)

    # nn.Linear(2H, output_size): uniform(-1/sqrt(2H), 1/sqrt(2H))
    k_fc = 1.0 / jnp.sqrt(jnp.float32(2 * HID_DIM))
    fc_w = jax.random.uniform(keys[ki], (OUTPUT_SIZE, 2 * HID_DIM),
                              jnp.float32, -k_fc, k_fc); ki += 1
    fc_b = jax.random.uniform(keys[ki], (OUTPUT_SIZE,),
                              jnp.float32, -k_fc, k_fc)
    params["fc"] = (fc_w, fc_b)
    return params


def prepare_params(params):
    """One-time weight prep: transpose, fold biases, concat directions, block-diag."""
    H = HID_DIM
    G = 4 * H

    def dir_prep(w_ih, w_hh, b_ih, b_hh):
        return (jnp.asarray(w_ih.T, jnp.float32),       # (in, 4H)
                jnp.asarray(w_hh.T, jnp.float32),       # (H, 4H)
                jnp.asarray(b_ih + b_hh, jnp.float32))  # (4H,)

    # layer 0: concat directions along the gate (output) axis -> 8H wide,
    # and build the block-diagonal recurrent weight for the fused per-step matmul
    wih0_f, whh0_f, b0_f = dir_prep(*params["l0_fwd"])
    wih0_b, whh0_b, b0_b = dir_prep(*params["l0_bwd"])
    w0_ih = jnp.concatenate([wih0_f, wih0_b], axis=1)                 # (E, 8H)
    b0 = jnp.concatenate([b0_f, b0_b]).reshape(1, 2 * G)
    zH = jnp.zeros((H, G), jnp.float32)
    w0_blk = jnp.concatenate(
        [jnp.concatenate([whh0_f, zH], axis=1),                       # rows 0:H  -> fwd
         jnp.concatenate([zH, whh0_b], axis=1)], axis=0)              # rows H:2H -> bwd

    # layer 1: both directions' input weights concatenated along the gate axis
    wih1_f, whh1_f, b1_f = dir_prep(*params["l1_fwd"])                # (2H,4H),(H,4H)
    wih1_b, _whh1_b, b1_b = dir_prep(*params["l1_bwd"])               # bwd W_hh unused
    w1_ih = jnp.concatenate([wih1_f, wih1_b], axis=1)                 # (2H, 8H)
    b1 = jnp.concatenate([b1_f, b1_b]).reshape(1, 2 * G)

    fc_w, fc_b = params["fc"]
    wfc = jnp.asarray(fc_w.T, jnp.float32)                            # (2H, O)
    bfc = jnp.asarray(fc_b.reshape(1, -1), jnp.float32)

    kernel_weights = (w0_ih, w0_blk, b0, w1_ih, whh1_f, b1, wfc, bfc)
    return jnp.asarray(params["embedding"], jnp.float32), kernel_weights


# ------------------------------- forward pass ---------------------------------
@jax.jit
def bilstm_forward(tokens, embedding, kernel_weights):
    # everything (embedding gather, layout, LSTM, FC) happens inside the kernel
    return _fused_bilstm_call(tokens, embedding, kernel_weights)     # (B, output_size)


# ---------------------------------- main ---------------------------------------
if __name__ == "__main__":
    key = jax.random.PRNGKey(0)
    k_tok, k_par = jax.random.split(key)

    tokens = jax.random.randint(k_tok, (BATCH, SEQ), 0, WORD_SIZE, dtype=jnp.int32)
    raw_params = init_params(k_par)
    embedding, kernel_weights = prepare_params(raw_params)

    out = bilstm_forward(tokens, embedding, kernel_weights)
    out = jax.block_until_ready(out)
    assert out.shape == (BATCH, OUTPUT_SIZE)
    assert out.dtype == jnp.float32
    print("KERNEL_OK")
</pallas_src>

<mosaic_0001>
module attributes {stable_mosaic.version = 11 : i64} {
  func.func @_bilstm_fused_kernel(%arg0: i32, %arg1: memref<2x8xi32, #tpu.memory_space<smem>>, %arg2: memref<50x32xf32, #tpu.memory_space<vmem>>, %arg3: memref<32x256xf32, #tpu.memory_space<vmem>>, %arg4: memref<64x256xf32, #tpu.memory_space<vmem>>, %arg5: memref<1x256xf32, #tpu.memory_space<vmem>>, %arg6: memref<64x256xf32, #tpu.memory_space<vmem>>, %arg7: memref<32x128xf32, #tpu.memory_space<vmem>>, %arg8: memref<1x256xf32, #tpu.memory_space<vmem>>, %arg9: memref<64x5xf32, #tpu.memory_space<vmem>>, %arg10: memref<1x5xf32, #tpu.memory_space<vmem>>, %arg11: memref<2x5xf32, #tpu.memory_space<vmem>>, %arg12: memref<64x32xf32, #tpu.memory_space<vmem>>) attributes {dimension_semantics = [#tpu.dimension_semantics<arbitrary>], iteration_bounds = array<i64: 1>, scalar_prefetch = 1 : i64, scratch_operands = 1 : i64, tpu.core_type = #tpu.core_type<tc>, window_params = [{pipeline_mode = #tpu.pipeline_mode<synchronous>, transform_indices = @transform_0, window_bounds = array<i64: 50, 32>}, {pipeline_mode = #tpu.pipeline_mode<synchronous>, transform_indices = @transform_1, window_bounds = array<i64: 32, 256>}, {pipeline_mode = #tpu.pipeline_mode<synchronous>, transform_indices = @transform_2, window_bounds = array<i64: 64, 256>}, {pipeline_mode = #tpu.pipeline_mode<synchronous>, transform_indices = @transform_3, window_bounds = array<i64: 1, 256>}, {pipeline_mode = #tpu.pipeline_mode<synchronous>, transform_indices = @transform_4, window_bounds = array<i64: 64, 256>}, {pipeline_mode = #tpu.pipeline_mode<synchronous>, transform_indices = @transform_5, window_bounds = array<i64: 32, 128>}, {pipeline_mode = #tpu.pipeline_mode<synchronous>, transform_indices = @transform_6, window_bounds = array<i64: 1, 256>}, {pipeline_mode = #tpu.pipeline_mode<synchronous>, transform_indices = @transform_7, window_bounds = array<i64: 64, 5>}, {pipeline_mode = #tpu.pipeline_mode<synchronous>, transform_indices = @transform_8, window_bounds = array<i64: 1, 5>}, {pipeline_mode = #tpu.pipeline_mode<synchronous>, transform_indices = @transform_9, window_bounds = array<i64: 2, 5>}]} {
    %cst = arith.constant 0.000000e+00 : f32
    %0 = vector.broadcast %cst : f32 to vector<64x32xf32>
    %c0 = arith.constant 0 : index
    %c0_0 = arith.constant 0 : index
    %1 = vector.load %arg12[%c0, %c0_0] : memref<64x32xf32, #tpu.memory_space<vmem>>, vector<64x32xf32>
    tpu.vector_store %arg12[%c0, %c0_0], %0 {strides = array<i32>} : memref<64x32xf32, #tpu.memory_space<vmem>>, vector<64x32xf32>,
    %c0_1 = arith.constant 0 : index
    %c0_2 = arith.constant 0 : index
    %2 = memref.load %arg1[%c0_1, %c0_2] : memref<2x8xi32, #tpu.memory_space<smem>>
    %3 = arith.index_cast %2 : i32 to index
    %c0_3 = arith.constant 0 : index
    %4 = vector.load %arg2[%3, %c0_3] : memref<50x32xf32, #tpu.memory_space<vmem>>, vector<1x32xf32>
    %c0_4 = arith.constant 0 : index
    %c0_5 = arith.constant 0 : index
    %5 = vector.load %arg12[%c0_4, %c0_5] : memref<64x32xf32, #tpu.memory_space<vmem>>, vector<1x32xf32>
    tpu.vector_store %arg12[%c0_4, %c0_5], %4 {strides = array<i32>} : memref<64x32xf32, #tpu.memory_space<vmem>>, vector<1x32xf32>,
    %c1 = arith.constant 1 : index
    %c0_6 = arith.constant 0 : index
    %6 = memref.load %arg1[%c1, %c0_6] : memref<2x8xi32, #tpu.memory_space<smem>>
    %7 = arith.index_cast %6 : i32 to index
    %c0_7 = arith.constant 0 : index
    %8 = vector.load %arg2[%7, %c0_7] : memref<50x32xf32, #tpu.memory_space<vmem>>, vector<1x32xf32>
    %c1_8 = arith.constant 1 : index
    %c0_9 = arith.constant 0 : index
    %9 = vector.load %arg12[%c1_8, %c0_9] : memref<64x32xf32, #tpu.memory_space<vmem>>, vector<1x32xf32>
    tpu.vector_store %arg12[%c1_8, %c0_9], %8 {strides = array<i32>} : memref<64x32xf32, #tpu.memory_space<vmem>>, vector<1x32xf32>,
    %c0_10 = arith.constant 0 : index
    %c1_11 = arith.constant 1 : index
    %10 = memref.load %arg1[%c0_10, %c1_11] : memref<2x8xi32, #tpu.memory_space<smem>>
    %11 = arith.index_cast %10 : i32 to index
    %c0_12 = arith.constant 0 : index
    %12 = vector.load %arg2[%11, %c0_12] : memref<50x32xf32, #tpu.memory_space<vmem>>, vector<1x32xf32>
    %c8 = arith.constant 8 : index
    %c0_13 = arith.constant 0 : index
    %13 = vector.load %arg12[%c8, %c0_13] : memref<64x32xf32, #tpu.memory_space<vmem>>, vector<1x32xf32>
    tpu.vector_store %arg12[%c8, %c0_13], %12 {strides = array<i32>} : memref<64x32xf32, #tpu.memory_space<vmem>>, vector<1x32xf32>,
    %c1_14 = arith.constant 1 : index
    %c1_15 = arith.constant 1 : index
    %14 = memref.load %arg1[%c1_14, %c1_15] : memref<2x8xi32, #tpu.memory_space<smem>>
    %15 = arith.index_cast %14 : i32 to index
    %c0_16 = arith.constant 0 : index
    %16 = vector.load %arg2[%15, %c0_16] : memref<50x32xf32, #tpu.memory_space<vmem>>, vector<1x32xf32>
    %c9 = arith.constant 9 : index
    %c0_17 = arith.constant 0 : index
    %17 = vector.load %arg12[%c9, %c0_17] : memref<64x32xf32, #tpu.memory_space<vmem>>, vector<1x32xf32>
    tpu.vector_store %arg12[%c9, %c0_17], %16 {strides = array<i32>} : memref<64x32xf32, #tpu.memory_space<vmem>>, vector<1x32xf32>,
    %c0_18 = arith.constant 0 : index
    %c2 = arith.constant 2 : index
    %18 = memref.load %arg1[%c0_18, %c2] : memref<2x8xi32, #tpu.memory_space<smem>>
    %19 = arith.index_cast %18 : i32 to index
    %c0_19 = arith.constant 0 : index
    %20 = vector.load %arg2[%19, %c0_19] : memref<50x32xf32, #tpu.memory_space<vmem>>, vector<1x32xf32>
    %c16 = arith.constant 16 : index
    %c0_20 = arith.constant 0 : index
    %21 = vector.load %arg12[%c16, %c0_20] : memref<64x32xf32, #tpu.memory_space<vmem>>, vector<1x32xf32>
    tpu.vector_store %arg12[%c16, %c0_20], %20 {strides = array<i32>} : memref<64x32xf32, #tpu.memory_space<vmem>>, vector<1x32xf32>,
    %c1_21 = arith.constant 1 : index
    %c2_22 = arith.constant 2 : index
    %22 = memref.load %arg1[%c1_21, %c2_22] : memref<2x8xi32, #tpu.memory_space<smem>>
    %23 = arith.index_cast %22 : i32 to index
    %c0_23 = arith.constant 0 : index
    %24 = vector.load %arg2[%23, %c0_23] : memref<50x32xf32, #tpu.memory_space<vmem>>, vector<1x32xf32>
    %c17 = arith.constant 17 : index
    %c0_24 = arith.constant 0 : index
    %25 = vector.load %arg12[%c17, %c0_24] : memref<64x32xf32, #tpu.memory_space<vmem>>, vector<1x32xf32>
    tpu.vector_store %arg12[%c17, %c0_24], %24 {strides = array<i32>} : memref<64x32xf32, #tpu.memory_space<vmem>>, vector<1x32xf32>,
    %c0_25 = arith.constant 0 : index
    %c3 = arith.constant 3 : index
    %26 = memref.load %arg1[%c0_25, %c3] : memref<2x8xi32, #tpu.memory_space<smem>>
    %27 = arith.index_cast %26 : i32 to index
    %c0_26 = arith.constant 0 : index
    %28 = vector.load %arg2[%27, %c0_26] : memref<50x32xf32, #tpu.memory_space<vmem>>, vector<1x32xf32>
    %c24 = arith.constant 24 : index
    %c0_27 = arith.constant 0 : index
    %29 = vector.load %arg12[%c24, %c0_27] : memref<64x32xf32, #tpu.memory_space<vmem>>, vector<1x32xf32>
    tpu.vector_store %arg12[%c24, %c0_27], %28 {strides = array<i32>} : memref<64x32xf32, #tpu.memory_space<vmem>>, vector<1x32xf32>,
    %c1_28 = arith.constant 1 : index
    %c3_29 = arith.constant 3 : index
    %30 = memref.load %arg1[%c1_28, %c3_29] : memref<2x8xi32, #tpu.memory_space<smem>>
    %31 = arith.index_cast %30 : i32 to index
    %c0_30 = arith.constant 0 : index
    %32 = vector.load %arg2[%31, %c0_30] : memref<50x32xf32, #tpu.memory_space<vmem>>, vector<1x32xf32>
    %c25 = arith.constant 25 : index
    %c0_31 = arith.constant 0 : index
    %33 = vector.load %arg12[%c25, %c0_31] : memref<64x32xf32, #tpu.memory_space<vmem>>, vector<1x32xf32>
    tpu.vector_store %arg12[%c25, %c0_31], %32 {strides = array<i32>} : memref<64x32xf32, #tpu.memory_space<vmem>>, vector<1x32xf32>,
    %c0_32 = arith.constant 0 : index
    %c4 = arith.constant 4 : index
    %34 = memref.load %arg1[%c0_32, %c4] : memref<2x8xi32, #tpu.memory_space<smem>>
    %35 = arith.index_cast %34 : i32 to index
    %c0_33 = arith.constant 0 : index
    %36 = vector.load %arg2[%35, %c0_33] : memref<50x32xf32, #tpu.memory_space<vmem>>, vector<1x32xf32>
    %c32 = arith.constant 32 : index
    %c0_34 = arith.constant 0 : index
    %37 = vector.load %arg12[%c32, %c0_34] : memref<64x32xf32, #tpu.memory_space<vmem>>, vector<1x32xf32>
    tpu.vector_store %arg12[%c32, %c0_34], %36 {strides = array<i32>} : memref<64x32xf32, #tpu.memory_space<vmem>>, vector<1x32xf32>,
    %c1_35 = arith.constant 1 : index
    %c4_36 = arith.constant 4 : index
    %38 = memref.load %arg1[%c1_35, %c4_36] : memref<2x8xi32, #tpu.memory_space<smem>>
    %39 = arith.index_cast %38 : i32 to index
    %c0_37 = arith.constant 0 : index
    %40 = vector.load %arg2[%39, %c0_37] : memref<50x32xf32, #tpu.memory_space<vmem>>, vector<1x32xf32>
    %c33 = arith.constant 33 : index
    %c0_38 = arith.constant 0 : index
    %41 = vector.load %arg12[%c33, %c0_38] : memref<64x32xf32, #tpu.memory_space<vmem>>, vector<1x32xf32>
    tpu.vector_store %arg12[%c33, %c0_38], %40 {strides = array<i32>} : memref<64x32xf32, #tpu.memory_space<vmem>>, vector<1x32xf32>,
    %c0_39 = arith.constant 0 : index
    %c5 = arith.constant 5 : index
    %42 = memref.load %arg1[%c0_39, %c5] : memref<2x8xi32, #tpu.memory_space<smem>>
    %43 = arith.index_cast %42 : i32 to index
    %c0_40 = arith.constant 0 : index
    %44 = vector.load %arg2[%43, %c0_40] : memref<50x32xf32, #tpu.memory_space<vmem>>, vector<1x32xf32>
    %c40 = arith.constant 40 : index
    %c0_41 = arith.constant 0 : index
    %45 = vector.load %arg12[%c40, %c0_41] : memref<64x32xf32, #tpu.memory_space<vmem>>, vector<1x32xf32>
    tpu.vector_store %arg12[%c40, %c0_41], %44 {strides = array<i32>} : memref<64x32xf32, #tpu.memory_space<vmem>>, vector<1x32xf32>,
    %c1_42 = arith.constant 1 : index
    %c5_43 = arith.constant 5 : index
    %46 = memref.load %arg1[%c1_42, %c5_43] : memref<2x8xi32, #tpu.memory_space<smem>>
    %47 = arith.index_cast %46 : i32 to index
    %c0_44 = arith.constant 0 : index
    %48 = vector.load %arg2[%47, %c0_44] : memref<50x32xf32, #tpu.memory_space<vmem>>, vector<1x32xf32>
    %c41 = arith.constant 41 : index
    %c0_45 = arith.constant 0 : index
    %49 = vector.load %arg12[%c41, %c0_45] : memref<64x32xf32, #tpu.memory_space<vmem>>, vector<1x32xf32>
    tpu.vector_store %arg12[%c41, %c0_45], %48 {strides = array<i32>} : memref<64x32xf32, #tpu.memory_space<vmem>>, vector<1x32xf32>,
    %c0_46 = arith.constant 0 : index
    %c6 = arith.constant 6 : index
    %50 = memref.load %arg1[%c0_46, %c6] : memref<2x8xi32, #tpu.memory_space<smem>>
    %51 = arith.index_cast %50 : i32 to index
    %c0_47 = arith.constant 0 : index
    %52 = vector.load %arg2[%51, %c0_47] : memref<50x32xf32, #tpu.memory_space<vmem>>, vector<1x32xf32>
    %c48 = arith.constant 48 : index
    %c0_48 = arith.constant 0 : index
    %53 = vector.load %arg12[%c48, %c0_48] : memref<64x32xf32, #tpu.memory_space<vmem>>, vector<1x32xf32>
    tpu.vector_store %arg12[%c48, %c0_48], %52 {strides = array<i32>} : memref<64x32xf32, #tpu.memory_space<vmem>>, vector<1x32xf32>,
    %c1_49 = arith.constant 1 : index
    %c6_50 = arith.constant 6 : index
    %54 = memref.load %arg1[%c1_49, %c6_50] : memref<2x8xi32, #tpu.memory_space<smem>>
    %55 = arith.index_cast %54 : i32 to index
    %c0_51 = arith.constant 0 : index
    %56 = vector.load %arg2[%55, %c0_51] : memref<50x32xf32, #tpu.memory_space<vmem>>, vector<1x32xf32>
    %c49 = arith.constant 49 : index
    %c0_52 = arith.constant 0 : index
    %57 = vector.load %arg12[%c49, %c0_52] : memref<64x32xf32, #tpu.memory_space<vmem>>, vector<1x32xf32>
    tpu.vector_store %arg12[%c49, %c0_52], %56 {strides = array<i32>} : memref<64x32xf32, #tpu.memory_space<vmem>>, vector<1x32xf32>,
    %c0_53 = arith.constant 0 : index
    %c7 = arith.constant 7 : index
    %58 = memref.load %arg1[%c0_53, %c7] : memref<2x8xi32, #tpu.memory_space<smem>>
    %59 = arith.index_cast %58 : i32 to index
    %c0_54 = arith.constant 0 : index
    %60 = vector.load %arg2[%59, %c0_54] : memref<50x32xf32, #tpu.memory_space<vmem>>, vector<1x32xf32>
    %c56 = arith.constant 56 : index
    %c0_55 = arith.constant 0 : index
    %61 = vector.load %arg12[%c56, %c0_55] : memref<64x32xf32, #tpu.memory_space<vmem>>, vector<1x32xf32>
    tpu.vector_store %arg12[%c56, %c0_55], %60 {strides = array<i32>} : memref<64x32xf32, #tpu.memory_space<vmem>>, vector<1x32xf32>,
    %c1_56 = arith.constant 1 : index
    %c7_57 = arith.constant 7 : index
    %62 = memref.load %arg1[%c1_56, %c7_57] : memref<2x8xi32, #tpu.memory_space<smem>>
    %63 = arith.index_cast %62 : i32 to index
    %c0_58 = arith.constant 0 : index
    %64 = vector.load %arg2[%63, %c0_58] : memref<50x32xf32, #tpu.memory_space<vmem>>, vector<1x32xf32>
    %c57 = arith.constant 57 : index
    %c0_59 = arith.constant 0 : index
    %65 = vector.load %arg12[%c57, %c0_59] : memref<64x32xf32, #tpu.memory_space<vmem>>, vector<1x32xf32>
    tpu.vector_store %arg12[%c57, %c0_59], %64 {strides = array<i32>} : memref<64x32xf32, #tpu.memory_space<vmem>>, vector<1x32xf32>,
    %c0_60 = arith.constant 0 : index
    %c0_61 = arith.constant 0 : index
    %66 = vector.load %arg12[%c0_60, %c0_61] : memref<64x32xf32, #tpu.memory_space<vmem>>, vector<64x32xf32>
    %c0_62 = arith.constant 0 : index
    %c0_63 = arith.constant 0 : index
    %67 = vector.load %arg3[%c0_62, %c0_63] : memref<32x256xf32, #tpu.memory_space<vmem>>, vector<32x256xf32>
    %cst_64 = arith.constant dense<0.000000e+00> : vector<64x256xf32>
    %68 = tpu.matmul %66, %67, %cst_64 {dimension_numbers = #tpu.dot_dimension_numbers<[1], [0], [0], [1], [0, 0, 1, 1], [], []>} : vector<64x32xf32>, vector<32x256xf32>, vector<64x256xf32> -> vector<64x256xf32>
    %c0_65 = arith.constant 0 : index
    %c0_66 = arith.constant 0 : index
    %69 = vector.load %arg5[%c0_65, %c0_66] : memref<1x256xf32, #tpu.memory_space<vmem>>, vector<1x256xf32>
    %70 = vector.broadcast %69 : vector<1x256xf32> to vector<64x256xf32>
    %71 = arith.addf %68, %70 : vector<64x256xf32>
    %c0_67 = arith.constant 0 : index
    %c0_68 = arith.constant 0 : index
    %72 = vector.load %arg4[%c0_67, %c0_68] : memref<64x256xf32, #tpu.memory_space<vmem>>, vector<64x256xf32>
    %cst_69 = arith.constant 0.000000e+00 : f32
    %73 = vector.broadcast %cst_69 : f32 to vector<8x32xf32>
    %cst_70 = arith.constant 0.000000e+00 : f32
    %74 = vector.broadcast %cst_70 : f32 to vector<8x64xf32>
    %cst_71 = arith.constant dense<0.000000e+00> : vector<8x256xf32>
    %75 = tpu.matmul %74, %72, %cst_71 {dimension_numbers = #tpu.dot_dimension_numbers<[1], [0], [0], [1], [0, 0, 1, 1], [], []>} : vector<8x64xf32>, vector<64x256xf32>, vector<8x256xf32> -> vector<8x256xf32>
    %76 = vector.extract_strided_slice %71 {offsets = [0, 0], sizes = [8, 128], strides = [1, 1]} : vector<64x256xf32> to vector<8x128xf32>
    %77 = vector.extract_strided_slice %75 {offsets = [0, 0], sizes = [8, 128], strides = [1, 1]} : vector<8x256xf32> to vector<8x128xf32>
    %78 = arith.addf %76, %77 : vector<8x128xf32>
    %79 = arith.negf %78 : vector<8x128xf32>
    %80 = math.exp %79 : vector<8x128xf32>
    %cst_72 = arith.constant 1.000000e+00 : f32
    %81 = vector.broadcast %cst_72 : f32 to vector<8x128xf32>
    %82 = arith.addf %81, %80 : vector<8x128xf32>
    %83 = arith.divf %81, %82 : vector<8x128xf32>
    %84 = math.tanh %78 : vector<8x128xf32>
    %85 = vector.extract_strided_slice %83 {offsets = [0, 0], sizes = [8, 32], strides = [1, 1]} : vector<8x128xf32> to vector<8x32xf32>
    %86 = vector.extract_strided_slice %83 {offsets = [0, 32], sizes = [8, 32], strides = [1, 1]} : vector<8x128xf32> to vector<8x32xf32>
    %87 = vector.extract_strided_slice %84 {offsets = [0, 64], sizes = [8, 32], strides = [1, 1]} : vector<8x128xf32> to vector<8x32xf32>
    %88 = vector.extract_strided_slice %83 {offsets = [0, 96], sizes = [8, 32], strides = [1, 1]} : vector<8x128xf32> to vector<8x32xf32>
    %89 = arith.mulf %86, %73 : vector<8x32xf32>
    %90 = arith.mulf %85, %87 : vector<8x32xf32>
    %91 = arith.addf %89, %90 : vector<8x32xf32>
    %92 = math.tanh %91 : vector<8x32xf32>
    %93 = arith.mulf %88, %92 : vector<8x32xf32>
    %94 = vector.extract_strided_slice %71 {offsets = [56, 128], sizes = [8, 128], strides = [1, 1]} : vector<64x256xf32> to vector<8x128xf32>
    %95 = vector.extract_strided_slice %75 {offsets = [0, 128], sizes = [8, 128], strides = [1, 1]} : vector<8x256xf32> to vector<8x128xf32>
    %96 = arith.addf %94, %95 : vector<8x128xf32>
    %97 = arith.negf %96 : vector<8x128xf32>
    %98 = math.exp %97 : vector<8x128xf32>
    %cst_73 = arith.constant 1.000000e+00 : f32
    %99 = vector.broadcast %cst_73 : f32 to vector<8x128xf32>
    %100 = arith.addf %99, %98 : vector<8x128xf32>
    %101 = arith.divf %99, %100 : vector<8x128xf32>
    %102 = math.tanh %96 : vector<8x128xf32>
    %103 = vector.extract_strided_slice %101 {offsets = [0, 0], sizes = [8, 32], strides = [1, 1]} : vector<8x128xf32> to vector<8x32xf32>
    %104 = vector.extract_strided_slice %101 {offsets = [0, 32], sizes = [8, 32], strides = [1, 1]} : vector<8x128xf32> to vector<8x32xf32>
    %105 = vector.extract_strided_slice %102 {offsets = [0, 64], sizes = [8, 32], strides = [1, 1]} : vector<8x128xf32> to vector<8x32xf32>
    %106 = vector.extract_strided_slice %101 {offsets = [0, 96], sizes = [8, 32], strides = [1, 1]} : vector<8x128xf32> to vector<8x32xf32>
    %107 = arith.mulf %104, %73 : vector<8x32xf32>
    %108 = arith.mulf %103, %105 : vector<8x32xf32>
    %109 = arith.addf %107, %108 : vector<8x32xf32>
    %110 = math.tanh %109 : vector<8x32xf32>
    %111 = arith.mulf %106, %110 : vector<8x32xf32>
    %112 = tpu.concatenate %93, %111 in 1 : vector<8x32xf32>, vector<8x32xf32> -> vector<8x64xf32>
    %cst_74 = arith.constant dense<0.000000e+00> : vector<8x256xf32>
    %113 = tpu.matmul %112, %72, %cst_74 {dimension_numbers = #tpu.dot_dimension_numbers<[1], [0], [0], [1], [0, 0, 1, 1], [], []>} : vector<8x64xf32>, vector<64x256xf32>, vector<8x256xf32> -> vector<8x256xf32>
    %114 = vector.extract_strided_slice %71 {offsets = [8, 0], sizes = [8, 128], strides = [1, 1]} : vector<64x256xf32> to vector<8x128xf32>
    %115 = vector.extract_strided_slice %113 {offsets = [0, 0], sizes = [8, 128], strides = [1, 1]} : vector<8x256xf32> to vector<8x128xf32>
    %116 = arith.addf %114, %115 : vector<8x128xf32>
    %117 = arith.negf %116 : vector<8x128xf32>
    %118 = math.exp %117 : vector<8x128xf32>
    %cst_75 = arith.constant 1.000000e+00 : f32
    %119 = vector.broadcast %cst_75 : f32 to vector<8x128xf32>
    %120 = arith.addf %119, %118 : vector<8x128xf32>
    %121 = arith.divf %119, %120 : vector<8x128xf32>
    %122 = math.tanh %116 : vector<8x128xf32>
    %123 = vector.extract_strided_slice %121 {offsets = [0, 0], sizes = [8, 32], strides = [1, 1]} : vector<8x128xf32> to vector<8x32xf32>
    %124 = vector.extract_strided_slice %121 {offsets = [0, 32], sizes = [8, 32], strides = [1, 1]} : vector<8x128xf32> to vector<8x32xf32>
    %125 = vector.extract_strided_slice %122 {offsets = [0, 64], sizes = [8, 32], strides = [1, 1]} : vector<8x128xf32> to vector<8x32xf32>
    %126 = vector.extract_strided_slice %121 {offsets = [0, 96], sizes = [8, 32], strides = [1, 1]} : vector<8x128xf32> to vector<8x32xf32>
    %127 = arith.mulf %124, %91 : vector<8x32xf32>
    %128 = arith.mulf %123, %125 : vector<8x32xf32>
    %129 = arith.addf %127, %128 : vector<8x32xf32>
    %130 = math.tanh %129 : vector<8x32xf32>
    %131 = arith.mulf %126, %130 : vector<8x32xf32>
    %132 = vector.extract_strided_slice %71 {offsets = [48, 128], sizes = [8, 128], strides = [1, 1]} : vector<64x256xf32> to vector<8x128xf32>
    %133 = vector.extract_strided_slice %113 {offsets = [0, 128], sizes = [8, 128], strides = [1, 1]} : vector<8x256xf32> to vector<8x128xf32>
    %134 = arith.addf %132, %133 : vector<8x128xf32>
    %135 = arith.negf %134 : vector<8x128xf32>
    %136 = math.exp %135 : vector<8x128xf32>
    %cst_76 = arith.constant 1.000000e+00 : f32
    %137 = vector.broadcast %cst_76 : f32 to vector<8x128xf32>
    %138 = arith.addf %137, %136 : vector<8x128xf32>
    %139 = arith.divf %137, %138 : vector<8x128xf32>
    %140 = math.tanh %134 : vector<8x128xf32>
    %141 = vector.extract_strided_slice %139 {offsets = [0, 0], sizes = [8, 32], strides = [1, 1]} : vector<8x128xf32> to vector<8x32xf32>
    %142 = vector.extract_strided_slice %139 {offsets = [0, 32], sizes = [8, 32], strides = [1, 1]} : vector<8x128xf32> to vector<8x32xf32>
    %143 = vector.extract_strided_slice %140 {offsets = [0, 64], sizes = [8, 32], strides = [1, 1]} : vector<8x128xf32> to vector<8x32xf32>
    %144 = vector.extract_strided_slice %139 {offsets = [0, 96], sizes = [8, 32], strides = [1, 1]} : vector<8x128xf32> to vector<8x32xf32>
    %145 = arith.mulf %142, %109 : vector<8x32xf32>
    %146 = arith.mulf %141, %143 : vector<8x32xf32>
    %147 = arith.addf %145, %146 : vector<8x32xf32>
    %148 = math.tanh %147 : vector<8x32xf32>
    %149 = arith.mulf %144, %148 : vector<8x32xf32>
    %150 = tpu.concatenate %131, %149 in 1 : vector<8x32xf32>, vector<8x32xf32> -> vector<8x64xf32>
    %cst_77 = arith.constant dense<0.000000e+00> : vector<8x256xf32>
    %151 = tpu.matmul %150, %72, %cst_77 {dimension_numbers = #tpu.dot_dimension_numbers<[1], [0], [0], [1], [0, 0, 1, 1], [], []>} : vector<8x64xf32>, vector<64x256xf32>, vector<8x256xf32> -> vector<8x256xf32>
    %152 = vector.extract_strided_slice %71 {offsets = [16, 0], sizes = [8, 128], strides = [1, 1]} : vector<64x256xf32> to vector<8x128xf32>
    %153 = vector.extract_strided_slice %151 {offsets = [0, 0], sizes = [8, 128], strides = [1, 1]} : vector<8x256xf32> to vector<8x128xf32>
    %154 = arith.addf %152, %153 : vector<8x128xf32>
    %155 = arith.negf %154 : vector<8x128xf32>
    %156 = math.exp %155 : vector<8x128xf32>
    %cst_78 = arith.constant 1.000000e+00 : f32
    %157 = vector.broadcast %cst_78 : f32 to vector<8x128xf32>
    %158 = arith.addf %157, %156 : vector<8x128xf32>
    %159 = arith.divf %157, %158 : vector<8x128xf32>
    %160 = math.tanh %154 : vector<8x128xf32>
    %161 = vector.extract_strided_slice %159 {offsets = [0, 0], sizes = [8, 32], strides = [1, 1]} : vector<8x128xf32> to vector<8x32xf32>
    %162 = vector.extract_strided_slice %159 {offsets = [0, 32], sizes = [8, 32], strides = [1, 1]} : vector<8x128xf32> to vector<8x32xf32>
    %163 = vector.extract_strided_slice %160 {offsets = [0, 64], sizes = [8, 32], strides = [1, 1]} : vector<8x128xf32> to vector<8x32xf32>
    %164 = vector.extract_strided_slice %159 {offsets = [0, 96], sizes = [8, 32], strides = [1, 1]} : vector<8x128xf32> to vector<8x32xf32>
    %165 = arith.mulf %162, %129 : vector<8x32xf32>
    %166 = arith.mulf %161, %163 : vector<8x32xf32>
    %167 = arith.addf %165, %166 : vector<8x32xf32>
    %168 = math.tanh %167 : vector<8x32xf32>
    %169 = arith.mulf %164, %168 : vector<8x32xf32>
    %170 = vector.extract_strided_slice %71 {offsets = [40, 128], sizes = [8, 128], strides = [1, 1]} : vector<64x256xf32> to vector<8x128xf32>
    %171 = vector.extract_strided_slice %151 {offsets = [0, 128], sizes = [8, 128], strides = [1, 1]} : vector<8x256xf32> to vector<8x128xf32>
    %172 = arith.addf %170, %171 : vector<8x128xf32>
    %173 = arith.negf %172 : vector<8x128xf32>
    %174 = math.exp %173 : vector<8x128xf32>
    %cst_79 = arith.constant 1.000000e+00 : f32
    %175 = vector.broadcast %cst_79 : f32 to vector<8x128xf32>
    %176 = arith.addf %175, %174 : vector<8x128xf32>
    %177 = arith.divf %175, %176 : vector<8x128xf32>
    %178 = math.tanh %172 : vector<8x128xf32>
    %179 = vector.extract_strided_slice %177 {offsets = [0, 0], sizes = [8, 32], strides = [1, 1]} : vector<8x128xf32> to vector<8x32xf32>
    %180 = vector.extract_strided_slice %177 {offsets = [0, 32], sizes = [8, 32], strides = [1, 1]} : vector<8x128xf32> to vector<8x32xf32>
    %181 = vector.extract_strided_slice %178 {offsets = [0, 64], sizes = [8, 32], strides = [1, 1]} : vector<8x128xf32> to vector<8x32xf32>
    %182 = vector.extract_strided_slice %177 {offsets = [0, 96], sizes = [8, 32], strides = [1, 1]} : vector<8x128xf32> to vector<8x32xf32>
    %183 = arith.mulf %180, %147 : vector<8x32xf32>
    %184 = arith.mulf %179, %181 : vector<8x32xf32>
    %185 = arith.addf %183, %184 : vector<8x32xf32>
    %186 = math.tanh %185 : vector<8x32xf32>
    %187 = arith.mulf %182, %186 : vector<8x32xf32>
    %188 = tpu.concatenate %169, %187 in 1 : vector<8x32xf32>, vector<8x32xf32> -> vector<8x64xf32>
    %cst_80 = arith.constant dense<0.000000e+00> : vector<8x256xf32>
    %189 = tpu.matmul %188, %72, %cst_80 {dimension_numbers = #tpu.dot_dimension_numbers<[1], [0], [0], [1], [0, 0, 1, 1], [], []>} : vector<8x64xf32>, vector<64x256xf32>, vector<8x256xf32> -> vector<8x256xf32>
    %190 = vector.extract_strided_slice %71 {offsets = [24, 0], sizes = [8, 128], strides = [1, 1]} : vector<64x256xf32> to vector<8x128xf32>
    %191 = vector.extract_strided_slice %189 {offsets = [0, 0], sizes = [8, 128], strides = [1, 1]} : vector<8x256xf32> to vector<8x128xf32>
    %192 = arith.addf %190, %191 : vector<8x128xf32>
    %193 = arith.negf %192 : vector<8x128xf32>
    %194 = math.exp %193 : vector<8x128xf32>
    %cst_81 = arith.constant 1.000000e+00 : f32
    %195 = vector.broadcast %cst_81 : f32 to vector<8x128xf32>
    %196 = arith.addf %195, %194 : vector<8x128xf32>
    %197 = arith.divf %195, %196 : vector<8x128xf32>
    %198 = math.tanh %192 : vector<8x128xf32>
    %199 = vector.extract_strided_slice %197 {offsets = [0, 0], sizes = [8, 32], strides = [1, 1]} : vector<8x128xf32> to vector<8x32xf32>
    %200 = vector.extract_strided_slice %197 {offsets = [0, 32], sizes = [8, 32], strides = [1, 1]} : vector<8x128xf32> to vector<8x32xf32>
    %201 = vector.extract_strided_slice %198 {offsets = [0, 64], sizes = [8, 32], strides = [1, 1]} : vector<8x128xf32> to vector<8x32xf32>
    %202 = vector.extract_strided_slice %197 {offsets = [0, 96], sizes = [8, 32], strides = [1, 1]} : vector<8x128xf32> to vector<8x32xf32>
    %203 = arith.mulf %200, %167 : vector<8x32xf32>
    %204 = arith.mulf %199, %201 : vector<8x32xf32>
    %205 = arith.addf %203, %204 : vector<8x32xf32>
    %206 = math.tanh %205 : vector<8x32xf32>
    %207 = arith.mulf %202, %206 : vector<8x32xf32>
    %208 = vector.extract_strided_slice %71 {offsets = [32, 128], sizes = [8, 128], strides = [1, 1]} : vector<64x256xf32> to vector<8x128xf32>
    %209 = vector.extract_strided_slice %189 {offsets = [0, 128], sizes = [8, 128], strides = [1, 1]} : vector<8x256xf32> to vector<8x128xf32>
    %210 = arith.addf %208, %209 : vector<8x128xf32>
    %211 = arith.negf %210 : vector<8x128xf32>
    %212 = math.exp %211 : vector<8x128xf32>
    %cst_82 = arith.constant 1.000000e+00 : f32
    %213 = vector.broadcast %cst_82 : f32 to vector<8x128xf32>
    %214 = arith.addf %213, %212 : vector<8x128xf32>
    %215 = arith.divf %213, %214 : vector<8x128xf32>
    %216 = math.tanh %210 : vector<8x128xf32>
    %217 = vector.extract_strided_slice %215 {offsets = [0, 0], sizes = [8, 32], strides = [1, 1]} : vector<8x128xf32> to vector<8x32xf32>
    %218 = vector.extract_strided_slice %215 {offsets = [0, 32], sizes = [8, 32], strides = [1, 1]} : vector<8x128xf32> to vector<8x32xf32>
    %219 = vector.extract_strided_slice %216 {offsets = [0, 64], sizes = [8, 32], strides = [1, 1]} : vector<8x128xf32> to vector<8x32xf32>
    %220 = vector.extract_strided_slice %215 {offsets = [0, 96], sizes = [8, 32], strides = [1, 1]} : vector<8x128xf32> to vector<8x32xf32>
    %221 = arith.mulf %218, %185 : vector<8x32xf32>
    %222 = arith.mulf %217, %219 : vector<8x32xf32>
    %223 = arith.addf %221, %222 : vector<8x32xf32>
    %224 = math.tanh %223 : vector<8x32xf32>
    %225 = arith.mulf %220, %224 : vector<8x32xf32>
    %226 = tpu.concatenate %207, %225 in 1 : vector<8x32xf32>, vector<8x32xf32> -> vector<8x64xf32>
    %cst_83 = arith.constant dense<0.000000e+00> : vector<8x256xf32>
    %227 = tpu.matmul %226, %72, %cst_83 {dimension_numbers = #tpu.dot_dimension_numbers<[1], [0], [0], [1], [0, 0, 1, 1], [], []>} : vector<8x64xf32>, vector<64x256xf32>, vector<8x256xf32> -> vector<8x256xf32>
    %228 = vector.extract_strided_slice %71 {offsets = [32, 0], sizes = [8, 128], strides = [1, 1]} : vector<64x256xf32> to vector<8x128xf32>
    %229 = vector.extract_strided_slice %227 {offsets = [0, 0], sizes = [8, 128], strides = [1, 1]} : vector<8x256xf32> to vector<8x128xf32>
    %230 = arith.addf %228, %229 : vector<8x128xf32>
    %231 = arith.negf %230 : vector<8x128xf32>
    %232 = math.exp %231 : vector<8x128xf32>
    %cst_84 = arith.constant 1.000000e+00 : f32
    %233 = vector.broadcast %cst_84 : f32 to vector<8x128xf32>
    %234 = arith.addf %233, %232 : vector<8x128xf32>
    %235 = arith.divf %233, %234 : vector<8x128xf32>
    %236 = math.tanh %230 : vector<8x128xf32>
    %237 = vector.extract_strided_slice %235 {offsets = [0, 0], sizes = [8, 32], strides = [1, 1]} : vector<8x128xf32> to vector<8x32xf32>
    %238 = vector.extract_strided_slice %235 {offsets = [0, 32], sizes = [8, 32], strides = [1, 1]} : vector<8x128xf32> to vector<8x32xf32>
    %239 = vector.extract_strided_slice %236 {offsets = [0, 64], sizes = [8, 32], strides = [1, 1]} : vector<8x128xf32> to vector<8x32xf32>
    %240 = vector.extract_strided_slice %235 {offsets = [0, 96], sizes = [8, 32], strides = [1, 1]} : vector<8x128xf32> to vector<8x32xf32>
    %241 = arith.mulf %238, %205 : vector<8x32xf32>
    %242 = arith.mulf %237, %239 : vector<8x32xf32>
    %243 = arith.addf %241, %242 : vector<8x32xf32>
    %244 = math.tanh %243 : vector<8x32xf32>
    %245 = arith.mulf %240, %244 : vector<8x32xf32>
    %246 = vector.extract_strided_slice %71 {offsets = [24, 128], sizes = [8, 128], strides = [1, 1]} : vector<64x256xf32> to vector<8x128xf32>
    %247 = vector.extract_strided_slice %227 {offsets = [0, 128], sizes = [8, 128], strides = [1, 1]} : vector<8x256xf32> to vector<8x128xf32>
    %248 = arith.addf %246, %247 : vector<8x128xf32>
    %249 = arith.negf %248 : vector<8x128xf32>
    %250 = math.exp %249 : vector<8x128xf32>
    %cst_85 = arith.constant 1.000000e+00 : f32
    %251 = vector.broadcast %cst_85 : f32 to vector<8x128xf32>
    %252 = arith.addf %251, %250 : vector<8x128xf32>
    %253 = arith.divf %251, %252 : vector<8x128xf32>
    %254 = math.tanh %248 : vector<8x128xf32>
    %255 = vector.extract_strided_slice %253 {offsets = [0, 0], sizes = [8, 32], strides = [1, 1]} : vector<8x128xf32> to vector<8x32xf32>
    %256 = vector.extract_strided_slice %253 {offsets = [0, 32], sizes = [8, 32], strides = [1, 1]} : vector<8x128xf32> to vector<8x32xf32>
    %257 = vector.extract_strided_slice %254 {offsets = [0, 64], sizes = [8, 32], strides = [1, 1]} : vector<8x128xf32> to vector<8x32xf32>
    %258 = vector.extract_strided_slice %253 {offsets = [0, 96], sizes = [8, 32], strides = [1, 1]} : vector<8x128xf32> to vector<8x32xf32>
    %259 = arith.mulf %256, %223 : vector<8x32xf32>
    %260 = arith.mulf %255, %257 : vector<8x32xf32>
    %261 = arith.addf %259, %260 : vector<8x32xf32>
    %262 = math.tanh %261 : vector<8x32xf32>
    %263 = arith.mulf %258, %262 : vector<8x32xf32>
    %264 = tpu.concatenate %245, %263 in 1 : vector<8x32xf32>, vector<8x32xf32> -> vector<8x64xf32>
    %cst_86 = arith.constant dense<0.000000e+00> : vector<8x256xf32>
    %265 = tpu.matmul %264, %72, %cst_86 {dimension_numbers = #tpu.dot_dimension_numbers<[1], [0], [0], [1], [0, 0, 1, 1], [], []>} : vector<8x64xf32>, vector<64x256xf32>, vector<8x256xf32> -> vector<8x256xf32>
    %266 = vector.extract_strided_slice %71 {offsets = [40, 0], sizes = [8, 128], strides = [1, 1]} : vector<64x256xf32> to vector<8x128xf32>
    %267 = vector.extract_strided_slice %265 {offsets = [0, 0], sizes = [8, 128], strides = [1, 1]} : vector<8x256xf32> to vector<8x128xf32>
    %268 = arith.addf %266, %267 : vector<8x128xf32>
    %269 = arith.negf %268 : vector<8x128xf32>
    %270 = math.exp %269 : vector<8x128xf32>
    %cst_87 = arith.constant 1.000000e+00 : f32
    %271 = vector.broadcast %cst_87 : f32 to vector<8x128xf32>
    %272 = arith.addf %271, %270 : vector<8x128xf32>
    %273 = arith.divf %271, %272 : vector<8x128xf32>
    %274 = math.tanh %268 : vector<8x128xf32>
    %275 = vector.extract_strided_slice %273 {offsets = [0, 0], sizes = [8, 32], strides = [1, 1]} : vector<8x128xf32> to vector<8x32xf32>
    %276 = vector.extract_strided_slice %273 {offsets = [0, 32], sizes = [8, 32], strides = [1, 1]} : vector<8x128xf32> to vector<8x32xf32>
    %277 = vector.extract_strided_slice %274 {offsets = [0, 64], sizes = [8, 32], strides = [1, 1]} : vector<8x128xf32> to vector<8x32xf32>
    %278 = vector.extract_strided_slice %273 {offsets = [0, 96], sizes = [8, 32], strides = [1, 1]} : vector<8x128xf32> to vector<8x32xf32>
    %279 = arith.mulf %276, %243 : vector<8x32xf32>
    %280 = arith.mulf %275, %277 : vector<8x32xf32>
    %281 = arith.addf %279, %280 : vector<8x32xf32>
    %282 = math.tanh %281 : vector<8x32xf32>
    %283 = arith.mulf %278, %282 : vector<8x32xf32>
    %284 = vector.extract_strided_slice %71 {offsets = [16, 128], sizes = [8, 128], strides = [1, 1]} : vector<64x256xf32> to vector<8x128xf32>
    %285 = vector.extract_strided_slice %265 {offsets = [0, 128], sizes = [8, 128], strides = [1, 1]} : vector<8x256xf32> to vector<8x128xf32>
    %286 = arith.addf %284, %285 : vector<8x128xf32>
    %287 = arith.negf %286 : vector<8x128xf32>
    %288 = math.exp %287 : vector<8x128xf32>
    %cst_88 = arith.constant 1.000000e+00 : f32
    %289 = vector.broadcast %cst_88 : f32 to vector<8x128xf32>
    %290 = arith.addf %289, %288 : vector<8x128xf32>
    %291 = arith.divf %289, %290 : vector<8x128xf32>
    %292 = math.tanh %286 : vector<8x128xf32>
    %293 = vector.extract_strided_slice %291 {offsets = [0, 0], sizes = [8, 32], strides = [1, 1]} : vector<8x128xf32> to vector<8x32xf32>
    %294 = vector.extract_strided_slice %291 {offsets = [0, 32], sizes = [8, 32], strides = [1, 1]} : vector<8x128xf32> to vector<8x32xf32>
    %295 = vector.extract_strided_slice %292 {offsets = [0, 64], sizes = [8, 32], strides = [1, 1]} : vector<8x128xf32> to vector<8x32xf32>
    %296 = vector.extract_strided_slice %291 {offsets = [0, 96], sizes = [8, 32], strides = [1, 1]} : vector<8x128xf32> to vector<8x32xf32>
    %297 = arith.mulf %294, %261 : vector<8x32xf32>
    %298 = arith.mulf %293, %295 : vector<8x32xf32>
    %299 = arith.addf %297, %298 : vector<8x32xf32>
    %300 = math.tanh %299 : vector<8x32xf32>
    %301 = arith.mulf %296, %300 : vector<8x32xf32>
    %302 = tpu.concatenate %283, %301 in 1 : vector<8x32xf32>, vector<8x32xf32> -> vector<8x64xf32>
    %cst_89 = arith.constant dense<0.000000e+00> : vector<8x256xf32>
    %303 = tpu.matmul %302, %72, %cst_89 {dimension_numbers = #tpu.dot_dimension_numbers<[1], [0], [0], [1], [0, 0, 1, 1], [], []>} : vector<8x64xf32>, vector<64x256xf32>, vector<8x256xf32> -> vector<8x256xf32>
    %304 = vector.extract_strided_slice %71 {offsets = [48, 0], sizes = [8, 128], strides = [1, 1]} : vector<64x256xf32> to vector<8x128xf32>
    %305 = vector.extract_strided_slice %303 {offsets = [0, 0], sizes = [8, 128], strides = [1, 1]} : vector<8x256xf32> to vector<8x128xf32>
    %306 = arith.addf %304, %305 : vector<8x128xf32>
    %307 = arith.negf %306 : vector<8x128xf32>
    %308 = math.exp %307 : vector<8x128xf32>
    %cst_90 = arith.constant 1.000000e+00 : f32
    %309 = vector.broadcast %cst_90 : f32 to vector<8x128xf32>
    %310 = arith.addf %309, %308 : vector<8x128xf32>
    %311 = arith.divf %309, %310 : vector<8x128xf32>
    %312 = math.tanh %306 : vector<8x128xf32>
    %313 = vector.extract_strided_slice %311 {offsets = [0, 0], sizes = [8, 32], strides = [1, 1]} : vector<8x128xf32> to vector<8x32xf32>
    %314 = vector.extract_strided_slice %311 {offsets = [0, 32], sizes = [8, 32], strides = [1, 1]} : vector<8x128xf32> to vector<8x32xf32>
    %315 = vector.extract_strided_slice %312 {offsets = [0, 64], sizes = [8, 32], strides = [1, 1]} : vector<8x128xf32> to vector<8x32xf32>
    %316 = vector.extract_strided_slice %311 {offsets = [0, 96], sizes = [8, 32], strides = [1, 1]} : vector<8x128xf32> to vector<8x32xf32>
    %317 = arith.mulf %314, %281 : vector<8x32xf32>
    %318 = arith.mulf %313, %315 : vector<8x32xf32>
    %319 = arith.addf %317, %318 : vector<8x32xf32>
    %320 = math.tanh %319 : vector<8x32xf32>
    %321 = arith.mulf %316, %320 : vector<8x32xf32>
    %322 = vector.extract_strided_slice %71 {offsets = [8, 128], sizes = [8, 128], strides = [1, 1]} : vector<64x256xf32> to vector<8x128xf32>
    %323 = vector.extract_strided_slice %303 {offsets = [0, 128], sizes = [8, 128], strides = [1, 1]} : vector<8x256xf32> to vector<8x128xf32>
    %324 = arith.addf %322, %323 : vector<8x128xf32>
    %325 = arith.negf %324 : vector<8x128xf32>
    %326 = math.exp %325 : vector<8x128xf32>
    %cst_91 = arith.constant 1.000000e+00 : f32
    %327 = vector.broadcast %cst_91 : f32 to vector<8x128xf32>
    %328 = arith.addf %327, %326 : vector<8x128xf32>
    %329 = arith.divf %327, %328 : vector<8x128xf32>
    %330 = math.tanh %324 : vector<8x128xf32>
    %331 = vector.extract_strided_slice %329 {offsets = [0, 0], sizes = [8, 32], strides = [1, 1]} : vector<8x128xf32> to vector<8x32xf32>
    %332 = vector.extract_strided_slice %329 {offsets = [0, 32], sizes = [8, 32], strides = [1, 1]} : vector<8x128xf32> to vector<8x32xf32>
    %333 = vector.extract_strided_slice %330 {offsets = [0, 64], sizes = [8, 32], strides = [1, 1]} : vector<8x128xf32> to vector<8x32xf32>
    %334 = vector.extract_strided_slice %329 {offsets = [0, 96], sizes = [8, 32], strides = [1, 1]} : vector<8x128xf32> to vector<8x32xf32>
    %335 = arith.mulf %332, %299 : vector<8x32xf32>
    %336 = arith.mulf %331, %333 : vector<8x32xf32>
    %337 = arith.addf %335, %336 : vector<8x32xf32>
    %338 = math.tanh %337 : vector<8x32xf32>
    %339 = arith.mulf %334, %338 : vector<8x32xf32>
    %340 = tpu.concatenate %321, %339 in 1 : vector<8x32xf32>, vector<8x32xf32> -> vector<8x64xf32>
    %cst_92 = arith.constant dense<0.000000e+00> : vector<8x256xf32>
    %341 = tpu.matmul %340, %72, %cst_92 {dimension_numbers = #tpu.dot_dimension_numbers<[1], [0], [0], [1], [0, 0, 1, 1], [], []>} : vector<8x64xf32>, vector<64x256xf32>, vector<8x256xf32> -> vector<8x256xf32>
    %342 = vector.extract_strided_slice %71 {offsets = [56, 0], sizes = [8, 128], strides = [1, 1]} : vector<64x256xf32> to vector<8x128xf32>
    %343 = vector.extract_strided_slice %341 {offsets = [0, 0], sizes = [8, 128], strides = [1, 1]} : vector<8x256xf32> to vector<8x128xf32>
    %344 = arith.addf %342, %343 : vector<8x128xf32>
    %345 = arith.negf %344 : vector<8x128xf32>
    %346 = math.exp %345 : vector<8x128xf32>
    %cst_93 = arith.constant 1.000000e+00 : f32
    %347 = vector.broadcast %cst_93 : f32 to vector<8x128xf32>
    %348 = arith.addf %347, %346 : vector<8x128xf32>
    %349 = arith.divf %347, %348 : vector<8x128xf32>
    %350 = math.tanh %344 : vector<8x128xf32>
    %351 = vector.extract_strided_slice %349 {offsets = [0, 0], sizes = [8, 32], strides = [1, 1]} : vector<8x128xf32> to vector<8x32xf32>
    %352 = vector.extract_strided_slice %349 {offsets = [0, 32], sizes = [8, 32], strides = [1, 1]} : vector<8x128xf32> to vector<8x32xf32>
    %353 = vector.extract_strided_slice %350 {offsets = [0, 64], sizes = [8, 32], strides = [1, 1]} : vector<8x128xf32> to vector<8x32xf32>
    %354 = vector.extract_strided_slice %349 {offsets = [0, 96], sizes = [8, 32], strides = [1, 1]} : vector<8x128xf32> to vector<8x32xf32>
    %355 = arith.mulf %352, %319 : vector<8x32xf32>
    %356 = arith.mulf %351, %353 : vector<8x32xf32>
    %357 = arith.addf %355, %356 : vector<8x32xf32>
    %358 = math.tanh %357 : vector<8x32xf32>
    %359 = arith.mulf %354, %358 : vector<8x32xf32>
    %360 = vector.extract_strided_slice %71 {offsets = [0, 128], sizes = [8, 128], strides = [1, 1]} : vector<64x256xf32> to vector<8x128xf32>
    %361 = vector.extract_strided_slice %341 {offsets = [0, 128], sizes = [8, 128], strides = [1, 1]} : vector<8x256xf32> to vector<8x128xf32>
    %362 = arith.addf %360, %361 : vector<8x128xf32>
    %363 = arith.negf %362 : vector<8x128xf32>
    %364 = math.exp %363 : vector<8x128xf32>
    %cst_94 = arith.constant 1.000000e+00 : f32
    %365 = vector.broadcast %cst_94 : f32 to vector<8x128xf32>
    %366 = arith.addf %365, %364 : vector<8x128xf32>
    %367 = arith.divf %365, %366 : vector<8x128xf32>
    %368 = math.tanh %362 : vector<8x128xf32>
    %369 = vector.extract_strided_slice %367 {offsets = [0, 0], sizes = [8, 32], strides = [1, 1]} : vector<8x128xf32> to vector<8x32xf32>
    %370 = vector.extract_strided_slice %367 {offsets = [0, 32], sizes = [8, 32], strides = [1, 1]} : vector<8x128xf32> to vector<8x32xf32>
    %371 = vector.extract_strided_slice %368 {offsets = [0, 64], sizes = [8, 32], strides = [1, 1]} : vector<8x128xf32> to vector<8x32xf32>
    %372 = vector.extract_strided_slice %367 {offsets = [0, 96], sizes = [8, 32], strides = [1, 1]} : vector<8x128xf32> to vector<8x32xf32>
    %373 = arith.mulf %370, %337 : vector<8x32xf32>
    %374 = arith.mulf %369, %371 : vector<8x32xf32>
    %375 = arith.addf %373, %374 : vector<8x32xf32>
    %376 = math.tanh %375 : vector<8x32xf32>
    %377 = arith.mulf %372, %376 : vector<8x32xf32>
    %378 = tpu.concatenate %93, %131, %169, %207, %245, %283, %321, %359 in 0 : vector<8x32xf32>, vector<8x32xf32>, vector<8x32xf32>, vector<8x32xf32>, vector<8x32xf32>, vector<8x32xf32>, vector<8x32xf32>, vector<8x32xf32> -> vector<64x32xf32>
    %379 = tpu.concatenate %377, %339, %301, %263, %225, %187, %149, %111 in 0 : vector<8x32xf32>, vector<8x32xf32>, vector<8x32xf32>, vector<8x32xf32>, vector<8x32xf32>, vector<8x32xf32>, vector<8x32xf32>, vector<8x32xf32> -> vector<64x32xf32>
    %380 = tpu.concatenate %378, %379 in 1 : vector<64x32xf32>, vector<64x32xf32> -> vector<64x64xf32>
    %c0_95 = arith.constant 0 : index
    %c0_96 = arith.constant 0 : index
    %381 = vector.load %arg6[%c0_95, %c0_96] : memref<64x256xf32, #tpu.memory_space<vmem>>, vector<64x256xf32>
    %cst_97 = arith.constant dense<0.000000e+00> : vector<64x256xf32>
    %382 = tpu.matmul %380, %381, %cst_97 {dimension_numbers = #tpu.dot_dimension_numbers<[1], [0], [0], [1], [0, 0, 1, 1], [], []>} : vector<64x64xf32>, vector<64x256xf32>, vector<64x256xf32> -> vector<64x256xf32>
    %c0_98 = arith.constant 0 : index
    %c0_99 = arith.constant 0 : index
    %383 = vector.load %arg8[%c0_98, %c0_99] : memref<1x256xf32, #tpu.memory_space<vmem>>, vector<1x256xf32>
    %384 = vector.broadcast %383 : vector<1x256xf32> to vector<64x256xf32>
    %385 = arith.addf %382, %384 : vector<64x256xf32>
    %c0_100 = arith.constant 0 : index
    %c0_101 = arith.constant 0 : index
    %386 = vector.load %arg7[%c0_100, %c0_101] : memref<32x128xf32, #tpu.memory_space<vmem>>, vector<32x128xf32>
    %387 = vector.extract_strided_slice %385 {offsets = [0, 0], sizes = [8, 128], strides = [1, 1]} : vector<64x256xf32> to vector<8x128xf32>
    %cst_102 = arith.constant dense<0.000000e+00> : vector<8x128xf32>
    %388 = tpu.matmul %73, %386, %cst_102 {dimension_numbers = #tpu.dot_dimension_numbers<[1], [0], [0], [1], [0, 0, 1, 1], [], []>} : vector<8x32xf32>, vector<32x128xf32>, vector<8x128xf32> -> vector<8x128xf32>
    %389 = arith.addf %387, %388 : vector<8x128xf32>
    %390 = arith.negf %389 : vector<8x128xf32>
    %391 = math.exp %390 : vector<8x128xf32>
    %cst_103 = arith.constant 1.000000e+00 : f32
    %392 = vector.broadcast %cst_103 : f32 to vector<8x128xf32>
    %393 = arith.addf %392, %391 : vector<8x128xf32>
    %394 = arith.divf %392, %393 : vector<8x128xf32>
    %395 = math.tanh %389 : vector<8x128xf32>
    %396 = vector.extract_strided_slice %394 {offsets = [0, 0], sizes = [8, 32], strides = [1, 1]} : vector<8x128xf32> to vector<8x32xf32>
    %397 = vector.extract_strided_slice %394 {offsets = [0, 32], sizes = [8, 32], strides = [1, 1]} : vector<8x128xf32> to vector<8x32xf32>
    %398 = vector.extract_strided_slice %395 {offsets = [0, 64], sizes = [8, 32], strides = [1, 1]} : vector<8x128xf32> to vector<8x32xf32>
    %399 = vector.extract_strided_slice %394 {offsets = [0, 96], sizes = [8, 32], strides = [1, 1]} : vector<8x128xf32> to vector<8x32xf32>
    %400 = arith.mulf %397, %73 : vector<8x32xf32>
    %401 = arith.mulf %396, %398 : vector<8x32xf32>
    %402 = arith.addf %400, %401 : vector<8x32xf32>
    %403 = math.tanh %402 : vector<8x32xf32>
    %404 = arith.mulf %399, %403 : vector<8x32xf32>
    %405 = vector.extract_strided_slice %385 {offsets = [8, 0], sizes = [8, 128], strides = [1, 1]} : vector<64x256xf32> to vector<8x128xf32>
    %cst_104 = arith.constant dense<0.000000e+00> : vector<8x128xf32>
    %406 = tpu.matmul %404, %386, %cst_104 {dimension_numbers = #tpu.dot_dimension_numbers<[1], [0], [0], [1], [0, 0, 1, 1], [], []>} : vector<8x32xf32>, vector<32x128xf32>, vector<8x128xf32> -> vector<8x128xf32>
    %407 = arith.addf %405, %406 : vector<8x128xf32>
    %408 = arith.negf %407 : vector<8x128xf32>
    %409 = math.exp %408 : vector<8x128xf32>
    %cst_105 = arith.constant 1.000000e+00 : f32
    %410 = vector.broadcast %cst_105 : f32 to vector<8x128xf32>
    %411 = arith.addf %410, %409 : vector<8x128xf32>
    %412 = arith.divf %410, %411 : vector<8x128xf32>
    %413 = math.tanh %407 : vector<8x128xf32>
    %414 = vector.extract_strided_slice %412 {offsets = [0, 0], sizes = [8, 32], strides = [1, 1]} : vector<8x128xf32> to vector<8x32xf32>
    %415 = vector.extract_strided_slice %412 {offsets = [0, 32], sizes = [8, 32], strides = [1, 1]} : vector<8x128xf32> to vector<8x32xf32>
    %416 = vector.extract_strided_slice %413 {offsets = [0, 64], sizes = [8, 32], strides = [1, 1]} : vector<8x128xf32> to vector<8x32xf32>
    %417 = vector.extract_strided_slice %412 {offsets = [0, 96], sizes = [8, 32], strides = [1, 1]} : vector<8x128xf32> to vector<8x32xf32>
    %418 = arith.mulf %415, %402 : vector<8x32xf32>
    %419 = arith.mulf %414, %416 : vector<8x32xf32>
    %420 = arith.addf %418, %419 : vector<8x32xf32>
    %421 = math.tanh %420 : vector<8x32xf32>
    %422 = arith.mulf %417, %421 : vector<8x32xf32>
    %423 = vector.extract_strided_slice %385 {offsets = [16, 0], sizes = [8, 128], strides = [1, 1]} : vector<64x256xf32> to vector<8x128xf32>
    %cst_106 = arith.constant dense<0.000000e+00> : vector<8x128xf32>
    %424 = tpu.matmul %422, %386, %cst_106 {dimension_numbers = #tpu.dot_dimension_numbers<[1], [0], [0], [1], [0, 0, 1, 1], [], []>} : vector<8x32xf32>, vector<32x128xf32>, vector<8x128xf32> -> vector<8x128xf32>
    %425 = arith.addf %423, %424 : vector<8x128xf32>
    %426 = arith.negf %425 : vector<8x128xf32>
    %427 = math.exp %426 : vector<8x128xf32>
    %cst_107 = arith.constant 1.000000e+00 : f32
    %428 = vector.broadcast %cst_107 : f32 to vector<8x128xf32>
    %429 = arith.addf %428, %427 : vector<8x128xf32>
    %430 = arith.divf %428, %429 : vector<8x128xf32>
    %431 = math.tanh %425 : vector<8x128xf32>
    %432 = vector.extract_strided_slice %430 {offsets = [0, 0], sizes = [8, 32], strides = [1, 1]} : vector<8x128xf32> to vector<8x32xf32>
    %433 = vector.extract_strided_slice %430 {offsets = [0, 32], sizes = [8, 32], strides = [1, 1]} : vector<8x128xf32> to vector<8x32xf32>
    %434 = vector.extract_strided_slice %431 {offsets = [0, 64], sizes = [8, 32], strides = [1, 1]} : vector<8x128xf32> to vector<8x32xf32>
    %435 = vector.extract_strided_slice %430 {offsets = [0, 96], sizes = [8, 32], strides = [1, 1]} : vector<8x128xf32> to vector<8x32xf32>
    %436 = arith.mulf %433, %420 : vector<8x32xf32>
    %437 = arith.mulf %432, %434 : vector<8x32xf32>
    %438 = arith.addf %436, %437 : vector<8x32xf32>
    %439 = math.tanh %438 : vector<8x32xf32>
    %440 = arith.mulf %435, %439 : vector<8x32xf32>
    %441 = vector.extract_strided_slice %385 {offsets = [24, 0], sizes = [8, 128], strides = [1, 1]} : vector<64x256xf32> to vector<8x128xf32>
    %cst_108 = arith.constant dense<0.000000e+00> : vector<8x128xf32>
    %442 = tpu.matmul %440, %386, %cst_108 {dimension_numbers = #tpu.dot_dimension_numbers<[1], [0], [0], [1], [0, 0, 1, 1], [], []>} : vector<8x32xf32>, vector<32x128xf32>, vector<8x128xf32> -> vector<8x128xf32>
    %443 = arith.addf %441, %442 : vector<8x128xf32>
    %444 = arith.negf %443 : vector<8x128xf32>
    %445 = math.exp %444 : vector<8x128xf32>
    %cst_109 = arith.constant 1.000000e+00 : f32
    %446 = vector.broadcast %cst_109 : f32 to vector<8x128xf32>
    %447 = arith.addf %446, %445 : vector<8x128xf32>
    %448 = arith.divf %446, %447 : vector<8x128xf32>
    %449 = math.tanh %443 : vector<8x128xf32>
    %450 = vector.extract_strided_slice %448 {offsets = [0, 0], sizes = [8, 32], strides = [1, 1]} : vector<8x128xf32> to vector<8x32xf32>
    %451 = vector.extract_strided_slice %448 {offsets = [0, 32], sizes = [8, 32], strides = [1, 1]} : vector<8x128xf32> to vector<8x32xf32>
    %452 = vector.extract_strided_slice %449 {offsets = [0, 64], sizes = [8, 32], strides = [1, 1]} : vector<8x128xf32> to vector<8x32xf32>
    %453 = vector.extract_strided_slice %448 {offsets = [0, 96], sizes = [8, 32], strides = [1, 1]} : vector<8x128xf32> to vector<8x32xf32>
    %454 = arith.mulf %451, %438 : vector<8x32xf32>
    %455 = arith.mulf %450, %452 : vector<8x32xf32>
    %456 = arith.addf %454, %455 : vector<8x32xf32>
    %457 = math.tanh %456 : vector<8x32xf32>
    %458 = arith.mulf %453, %457 : vector<8x32xf32>
    %459 = vector.extract_strided_slice %385 {offsets = [32, 0], sizes = [8, 128], strides = [1, 1]} : vector<64x256xf32> to vector<8x128xf32>
    %cst_110 = arith.constant dense<0.000000e+00> : vector<8x128xf32>
    %460 = tpu.matmul %458, %386, %cst_110 {dimension_numbers = #tpu.dot_dimension_numbers<[1], [0], [0], [1], [0, 0, 1, 1], [], []>} : vector<8x32xf32>, vector<32x128xf32>, vector<8x128xf32> -> vector<8x128xf32>
    %461 = arith.addf %459, %460 : vector<8x128xf32>
    %462 = arith.negf %461 : vector<8x128xf32>
    %463 = math.exp %462 : vector<8x128xf32>
    %cst_111 = arith.constant 1.000000e+00 : f32
    %464 = vector.broadcast %cst_111 : f32 to vector<8x128xf32>
    %465 = arith.addf %464, %463 : vector<8x128xf32>
    %466 = arith.divf %464, %465 : vector<8x128xf32>
    %467 = math.tanh %461 : vector<8x128xf32>
    %468 = vector.extract_strided_slice %466 {offsets = [0, 0], sizes = [8, 32], strides = [1, 1]} : vector<8x128xf32> to vector<8x32xf32>
    %469 = vector.extract_strided_slice %466 {offsets = [0, 32], sizes = [8, 32], strides = [1, 1]} : vector<8x128xf32> to vector<8x32xf32>
    %470 = vector.extract_strided_slice %467 {offsets = [0, 64], sizes = [8, 32], strides = [1, 1]} : vector<8x128xf32> to vector<8x32xf32>
    %471 = vector.extract_strided_slice %466 {offsets = [0, 96], sizes = [8, 32], strides = [1, 1]} : vector<8x128xf32> to vector<8x32xf32>
    %472 = arith.mulf %469, %456 : vector<8x32xf32>
    %473 = arith.mulf %468, %470 : vector<8x32xf32>
    %474 = arith.addf %472, %473 : vector<8x32xf32>
    %475 = math.tanh %474 : vector<8x32xf32>
    %476 = arith.mulf %471, %475 : vector<8x32xf32>
    %477 = vector.extract_strided_slice %385 {offsets = [40, 0], sizes = [8, 128], strides = [1, 1]} : vector<64x256xf32> to vector<8x128xf32>
    %cst_112 = arith.constant dense<0.000000e+00> : vector<8x128xf32>
    %478 = tpu.matmul %476, %386, %cst_112 {dimension_numbers = #tpu.dot_dimension_numbers<[1], [0], [0], [1], [0, 0, 1, 1], [], []>} : vector<8x32xf32>, vector<32x128xf32>, vector<8x128xf32> -> vector<8x128xf32>
    %479 = arith.addf %477, %478 : vector<8x128xf32>
    %480 = arith.negf %479 : vector<8x128xf32>
    %481 = math.exp %480 : vector<8x128xf32>
    %cst_113 = arith.constant 1.000000e+00 : f32
    %482 = vector.broadcast %cst_113 : f32 to vector<8x128xf32>
    %483 = arith.addf %482, %481 : vector<8x128xf32>
    %484 = arith.divf %482, %483 : vector<8x128xf32>
    %485 = math.tanh %479 : vector<8x128xf32>
    %486 = vector.extract_strided_slice %484 {offsets = [0, 0], sizes = [8, 32], strides = [1, 1]} : vector<8x128xf32> to vector<8x32xf32>
    %487 = vector.extract_strided_slice %484 {offsets = [0, 32], sizes = [8, 32], strides = [1, 1]} : vector<8x128xf32> to vector<8x32xf32>
    %488 = vector.extract_strided_slice %485 {offsets = [0, 64], sizes = [8, 32], strides = [1, 1]} : vector<8x128xf32> to vector<8x32xf32>
    %489 = vector.extract_strided_slice %484 {offsets = [0, 96], sizes = [8, 32], strides = [1, 1]} : vector<8x128xf32> to vector<8x32xf32>
    %490 = arith.mulf %487, %474 : vector<8x32xf32>
    %491 = arith.mulf %486, %488 : vector<8x32xf32>
    %492 = arith.addf %490, %491 : vector<8x32xf32>
    %493 = math.tanh %492 : vector<8x32xf32>
    %494 = arith.mulf %489, %493 : vector<8x32xf32>
    %495 = vector.extract_strided_slice %385 {offsets = [48, 0], sizes = [8, 128], strides = [1, 1]} : vector<64x256xf32> to vector<8x128xf32>
    %cst_114 = arith.constant dense<0.000000e+00> : vector<8x128xf32>
    %496 = tpu.matmul %494, %386, %cst_114 {dimension_numbers = #tpu.dot_dimension_numbers<[1], [0], [0], [1], [0, 0, 1, 1], [], []>} : vector<8x32xf32>, vector<32x128xf32>, vector<8x128xf32> -> vector<8x128xf32>
    %497 = arith.addf %495, %496 : vector<8x128xf32>
    %498 = arith.negf %497 : vector<8x128xf32>
    %499 = math.exp %498 : vector<8x128xf32>
    %cst_115 = arith.constant 1.000000e+00 : f32
    %500 = vector.broadcast %cst_115 : f32 to vector<8x128xf32>
    %501 = arith.addf %500, %499 : vector<8x128xf32>
    %502 = arith.divf %500, %501 : vector<8x128xf32>
    %503 = math.tanh %497 : vector<8x128xf32>
    %504 = vector.extract_strided_slice %502 {offsets = [0, 0], sizes = [8, 32], strides = [1, 1]} : vector<8x128xf32> to vector<8x32xf32>
    %505 = vector.extract_strided_slice %502 {offsets = [0, 32], sizes = [8, 32], strides = [1, 1]} : vector<8x128xf32> to vector<8x32xf32>
    %506 = vector.extract_strided_slice %503 {offsets = [0, 64], sizes = [8, 32], strides = [1, 1]} : vector<8x128xf32> to vector<8x32xf32>
    %507 = vector.extract_strided_slice %502 {offsets = [0, 96], sizes = [8, 32], strides = [1, 1]} : vector<8x128xf32> to vector<8x32xf32>
    %508 = arith.mulf %505, %492 : vector<8x32xf32>
    %509 = arith.mulf %504, %506 : vector<8x32xf32>
    %510 = arith.addf %508, %509 : vector<8x32xf32>
    %511 = math.tanh %510 : vector<8x32xf32>
    %512 = arith.mulf %507, %511 : vector<8x32xf32>
    %513 = vector.extract_strided_slice %385 {offsets = [56, 0], sizes = [8, 128], strides = [1, 1]} : vector<64x256xf32> to vector<8x128xf32>
    %cst_116 = arith.constant dense<0.000000e+00> : vector<8x128xf32>
    %514 = tpu.matmul %512, %386, %cst_116 {dimension_numbers = #tpu.dot_dimension_numbers<[1], [0], [0], [1], [0, 0, 1, 1], [], []>} : vector<8x32xf32>, vector<32x128xf32>, vector<8x128xf32> -> vector<8x128xf32>
    %515 = arith.addf %513, %514 : vector<8x128xf32>
    %516 = arith.negf %515 : vector<8x128xf32>
    %517 = math.exp %516 : vector<8x128xf32>
    %cst_117 = arith.constant 1.000000e+00 : f32
    %518 = vector.broadcast %cst_117 : f32 to vector<8x128xf32>
    %519 = arith.addf %518, %517 : vector<8x128xf32>
    %520 = arith.divf %518, %519 : vector<8x128xf32>
    %521 = math.tanh %515 : vector<8x128xf32>
    %522 = vector.extract_strided_slice %520 {offsets = [0, 0], sizes = [8, 32], strides = [1, 1]} : vector<8x128xf32> to vector<8x32xf32>
    %523 = vector.extract_strided_slice %520 {offsets = [0, 32], sizes = [8, 32], strides = [1, 1]} : vector<8x128xf32> to vector<8x32xf32>
    %524 = vector.extract_strided_slice %521 {offsets = [0, 64], sizes = [8, 32], strides = [1, 1]} : vector<8x128xf32> to vector<8x32xf32>
    %525 = vector.extract_strided_slice %520 {offsets = [0, 96], sizes = [8, 32], strides = [1, 1]} : vector<8x128xf32> to vector<8x32xf32>
    %526 = arith.mulf %523, %510 : vector<8x32xf32>
    %527 = arith.mulf %522, %524 : vector<8x32xf32>
    %528 = arith.addf %526, %527 : vector<8x32xf32>
    %529 = math.tanh %528 : vector<8x32xf32>
    %530 = arith.mulf %525, %529 : vector<8x32xf32>
    %531 = vector.extract_strided_slice %385 {offsets = [56, 128], sizes = [8, 128], strides = [1, 1]} : vector<64x256xf32> to vector<8x128xf32>
    %532 = arith.negf %531 : vector<8x128xf32>
    %533 = math.exp %532 : vector<8x128xf32>
    %cst_118 = arith.constant 1.000000e+00 : f32
    %534 = vector.broadcast %cst_118 : f32 to vector<8x128xf32>
    %535 = arith.addf %534, %533 : vector<8x128xf32>
    %536 = arith.divf %534, %535 : vector<8x128xf32>
    %537 = math.tanh %531 : vector<8x128xf32>
    %538 = vector.extract_strided_slice %536 {offsets = [0, 0], sizes = [8, 32], strides = [1, 1]} : vector<8x128xf32> to vector<8x32xf32>
    %539 = vector.extract_strided_slice %536 {offsets = [0, 32], sizes = [8, 32], strides = [1, 1]} : vector<8x128xf32> to vector<8x32xf32>
    %540 = vector.extract_strided_slice %537 {offsets = [0, 64], sizes = [8, 32], strides = [1, 1]} : vector<8x128xf32> to vector<8x32xf32>
    %541 = vector.extract_strided_slice %536 {offsets = [0, 96], sizes = [8, 32], strides = [1, 1]} : vector<8x128xf32> to vector<8x32xf32>
    %542 = arith.mulf %539, %73 : vector<8x32xf32>
    %543 = arith.mulf %538, %540 : vector<8x32xf32>
    %544 = arith.addf %542, %543 : vector<8x32xf32>
    %545 = math.tanh %544 : vector<8x32xf32>
    %546 = arith.mulf %541, %545 : vector<8x32xf32>
    %547 = tpu.concatenate %530, %546 in 1 : vector<8x32xf32>, vector<8x32xf32> -> vector<8x64xf32>
    %c0_119 = arith.constant 0 : index
    %c0_120 = arith.constant 0 : index
    %548 = vector.load %arg9[%c0_119, %c0_120] : memref<64x5xf32, #tpu.memory_space<vmem>>, vector<64x5xf32>
    %cst_121 = arith.constant dense<0.000000e+00> : vector<8x5xf32>
    %549 = tpu.matmul %547, %548, %cst_121 {dimension_numbers = #tpu.dot_dimension_numbers<[1], [0], [0], [1], [0, 0, 1, 1], [], []>} : vector<8x64xf32>, vector<64x5xf32>, vector<8x5xf32> -> vector<8x5xf32>
    %c0_122 = arith.constant 0 : index
    %c0_123 = arith.constant 0 : index
    %550 = vector.load %arg10[%c0_122, %c0_123] : memref<1x5xf32, #tpu.memory_space<vmem>>, vector<1x5xf32>
    %551 = vector.broadcast %550 : vector<1x5xf32> to vector<8x5xf32>
    %552 = arith.addf %549, %551 : vector<8x5xf32>
    %553 = vector.extract_strided_slice %552 {offsets = [0, 0], sizes = [2, 5], strides = [1, 1]} : vector<8x5xf32> to vector<2x5xf32>
    %c0_124 = arith.constant 0 : index
    %c0_125 = arith.constant 0 : index
    %554 = vector.load %arg11[%c0_124, %c0_125] : memref<2x5xf32, #tpu.memory_space<vmem>>, vector<2x5xf32>
    tpu.vector_store %arg11[%c0_124, %c0_125], %553 {strides = array<i32>} : memref<2x5xf32, #tpu.memory_space<vmem>>, vector<2x5xf32>,
    return
  }
  func.func @transform_0(%arg0: i32, %arg1: memref<2x8xi32, #tpu.memory_space<smem>>) -> (i32, i32) {
    %c0_i32 = arith.constant 0 : i32
    %c0_i32_0 = arith.constant 0 : i32
    %c0_i32_1 = arith.constant 0 : i32
    return %c0_i32, %c0_i32_0 : i32, i32
  }
  func.func @transform_1(%arg0: i32, %arg1: memref<2x8xi32, #tpu.memory_space<smem>>) -> (i32, i32) {
    %c0_i32 = arith.constant 0 : i32
    %c0_i32_0 = arith.constant 0 : i32
    %c0_i32_1 = arith.constant 0 : i32
    return %c0_i32, %c0_i32_0 : i32, i32
  }
  func.func @transform_2(%arg0: i32, %arg1: memref<2x8xi32, #tpu.memory_space<smem>>) -> (i32, i32) {
    %c0_i32 = arith.constant 0 : i32
    %c0_i32_0 = arith.constant 0 : i32
    %c0_i32_1 = arith.constant 0 : i32
    return %c0_i32, %c0_i32_0 : i32, i32
  }
  func.func @transform_3(%arg0: i32, %arg1: memref<2x8xi32, #tpu.memory_space<smem>>) -> (i32, i32) {
    %c0_i32 = arith.constant 0 : i32
    %c0_i32_0 = arith.constant 0 : i32
    %c0_i32_1 = arith.constant 0 : i32
    return %c0_i32, %c0_i32_0 : i32, i32
  }
  func.func @transform_4(%arg0: i32, %arg1: memref<2x8xi32, #tpu.memory_space<smem>>) -> (i32, i32) {
    %c0_i32 = arith.constant 0 : i32
    %c0_i32_0 = arith.constant 0 : i32
    %c0_i32_1 = arith.constant 0 : i32
    return %c0_i32, %c0_i32_0 : i32, i32
  }
  func.func @transform_5(%arg0: i32, %arg1: memref<2x8xi32, #tpu.memory_space<smem>>) -> (i32, i32) {
    %c0_i32 = arith.constant 0 : i32
    %c0_i32_0 = arith.constant 0 : i32
    %c0_i32_1 = arith.constant 0 : i32
    return %c0_i32, %c0_i32_0 : i32, i32
  }
  func.func @transform_6(%arg0: i32, %arg1: memref<2x8xi32, #tpu.memory_space<smem>>) -> (i32, i32) {
    %c0_i32 = arith.constant 0 : i32
    %c0_i32_0 = arith.constant 0 : i32
    %c0_i32_1 = arith.constant 0 : i32
    return %c0_i32, %c0_i32_0 : i32, i32
  }
  func.func @transform_7(%arg0: i32, %arg1: memref<2x8xi32, #tpu.memory_space<smem>>) -> (i32, i32) {
    %c0_i32 = arith.constant 0 : i32
    %c0_i32_0 = arith.constant 0 : i32
    %c0_i32_1 = arith.constant 0 : i32
    return %c0_i32, %c0_i32_0 : i32, i32
  }
  func.func @transform_8(%arg0: i32, %arg1: memref<2x8xi32, #tpu.memory_space<smem>>) -> (i32, i32) {
    %c0_i32 = arith.constant 0 : i32
    %c0_i32_0 = arith.constant 0 : i32
    %c0_i32_1 = arith.constant 0 : i32
    return %c0_i32, %c0_i32_0 : i32, i32
  }
  func.func @transform_9(%arg0: i32, %arg1: memref<2x8xi32, #tpu.memory_space<smem>>) -> (i32, i32) {
    %c0_i32 = arith.constant 0 : i32
    %c0_i32_0 = arith.constant 0 : i32
    %c0_i32_1 = arith.constant 0 : i32
    return %c0_i32, %c0_i32_0 : i32, i32
  }
}

</mosaic_0001>

<bundles_post_ra>
// kernel: bilstm_forward.1
= control target key start
LH: loop header
LB: loop body
LE: loop exit
PB: predicated region body
PF: predicated region fallthrough
CT: control target
= control target key end

     0   :  { %s4040_s0 = inlined_call_operand.vmem [shape: s32[2,8], index: 0, kind: input, shape index: {}]   ;;  %s4041_s1 = inlined_call_operand.vmem [shape: f32[50,32], index: 1, kind: input, shape index: {}]   ;;  %s4042_s2 = inlined_call_operand.hbm [shape: f32[32,256], index: 2, kind: input, shape index: {}]   ;;  %s4043_s3 = inlined_call_operand.vmem [shape: f32[64,256], index: 3, kind: input, shape index: {}]   ;;  %s4044_s4 = inlined_call_operand.vmem [shape: f32[1,256], index: 4, kind: input, shape index: {}]   ;;  %s4045_s5 = inlined_call_operand.hbm [shape: f32[64,256], index: 5, kind: input, shape index: {}]   ;;  %s4046_s6 = inlined_call_operand.vmem [shape: f32[32,128], index: 6, kind: input, shape index: {}]   ;;  %s4047_s7 = inlined_call_operand.vmem [shape: f32[1,256], index: 7, kind: input, shape index: {}]   ;;  %s4048_s8 = inlined_call_operand.vmem [shape: f32[64,5], index: 8, kind: input, shape index: {}]   ;;  %s4049_s9 = inlined_call_operand.vmem [shape: f32[1,5], index: 9, kind: input, shape index: {}]   ;;  %s4050_s10 = inlined_call_operand.hbm [shape: f32[2,5], index: 10, kind: output, shape index: {}]  }
   0x1   :  { %4052 = sst [smem:[#allocation15_spill]] %s4050_s10  ;;  %s15_s15 = sshll.u32 %s4040_s0, 4  ;;  %s16_s15 = int_to_ptr.vmem [resolvable:$true] %s15_s15 }
   0x2   :  { %s3180_s16 = scalar_lea.vmem %s16_s15, 32  ;;  %p3185_p1 = scmp.lt.s32.totalorder %s16_s15, %s16_s15 }
   0x3   :  { %p3181_p0 = scmp.ne.s32.totalorder %s16_s15, %s3180_s16  ;;  %p3186_p2 = scmp.lt.s32.totalorder %s3180_s16, %s3180_s16 }
   0x5   :  { %p3187_p3 = por %p3186_p2, %p3185_p1 }
   0x7   :  { %p3188_p4 = pnand %p3187_p3, %p3181_p0 }
   0x9   :  { %3191 = shalt.err (!%p3188_p4)  }
   0xa   :  { %s3266_s17 = smov [#allocation4]  }
   0xb   :  { %18 = dma.vmem_to_smem %s16_s15, 32, %s3266_s17, [#allocation3] }
   0xc   :  { %3258 = dma.done.wait [#allocation3], 32 }
   0xd   :  { %3259 = vsyncadd [#allocation3], 4294967264 }
   0xe   :  { %20 = sfence }
   0xf   :  { %21 = vsyncpa [#allocation6], 0 }
  0x10   :  { %22 = vsyncpa [#allocation9], 0 }
  0x11   :  { %23 = vsyncpa [#allocation7], 0  ;;  %s3267_s18 = smov [#allocation5]   ;;  %s3192_s21 = scalar_lea.hbm %s4042_s2, 1024 }
  0x12   :  { %s31_s19 = sshll.u32 %s3267_s18, 4  ;;  %p3193_p5 = scmp.ne.s32.totalorder %s4042_s2, %s3192_s21  ;;  %s32_s19 = int_to_ptr.vmem [resolvable:$true] %s31_s19 }
  0x13   :  { %p3196_p6 = scmp.lt.u32.totalorder %s3192_s21, %s4042_s2 }
  0x15   :  { %p3198_p7 = pnand %p3196_p6, %p3193_p5 }
  0x17   :  { %3201 = shalt.err (!%p3198_p7)
}
  0x18   :  { %s3202_s26 = scalar_lea.vmem %s32_s19, 1024  ;;  %p3207_p9 = scmp.lt.s32.totalorder %s32_s19, %s32_s19 }
  0x19   :  { %p3203_p8 = scmp.ne.s32.totalorder %s32_s19, %s3202_s26  ;;  %p3208_p10 = scmp.lt.s32.totalorder %s3202_s26, %s3202_s26 }
  0x1b   :  { %p3209_p11 = por %p3208_p10, %p3207_p9 }
  0x1d   :  { %p3210_p12 = pnand %p3209_p11, %p3203_p8 }
  0x1f   :  { %3213 = shalt.err (!%p3210_p12)
}
  0x20   :  { %s3268_s27 = smov 256   ;;  %s3269_s28 = smov 16  }
  0x21   :  { %37 = dma.hbm_to_vmem [thread:$0]  %s4042_s2, 1024, %s32_s19, [#allocation6], %s3268_s27, %s3268_s27, %s3269_s28  }
  0x22   :  { %s3270_s11 = smov [#allocation8]   ;;  %s3214_s15 = scalar_lea.hbm %s4045_s5, 2048 }
  0x23   :  { %s47_s12 = sshll.u32 %s3270_s11, 4  ;;  %p3215_p13 = scmp.ne.s32.totalorder %s4045_s5, %s3214_s15  ;;  %s48_s12 = int_to_ptr.vmem [resolvable:$true] %s47_s12 }
  0x24   :  { %p3218_p0 = scmp.lt.u32.totalorder %s3214_s15, %s4045_s5 }
  0x26   :  { %p3220_p1 = pnand %p3218_p0, %p3215_p13 }
  0x28   :  { %3223 = shalt.err (!%p3220_p1)
}
  0x29   :  { %s3224_s20 = scalar_lea.vmem %s48_s12, 2048  ;;  %p3229_p3 = scmp.lt.s32.totalorder %s48_s12, %s48_s12 }
  0x2a   :  { %p3225_p2 = scmp.ne.s32.totalorder %s48_s12, %s3224_s20  ;;  %p3230_p4 = scmp.lt.s32.totalorder %s3224_s20, %s3224_s20 }
  0x2c   :  { %p3231_p5 = por %p3230_p4, %p3229_p3 }
  0x2e   :  { %p3232_p6 = pnand %p3231_p5, %p3225_p2 }
  0x30   :  { %3235 = shalt.err (!%p3232_p6)
}
  0x31   :  { %53 = dma.hbm_to_vmem [thread:$0]  %s4045_s5, 2048, %s48_s12, [#allocation9], %s3268_s27, %s3268_s27, %s3269_s28  }
  0x32   :  { %3260 = dma.done.wait [#allocation6], 1024  }
  0x33   :  { %3261 = vsyncadd [#allocation6], 4294966272 }
  0x34   :  { %3262 = dma.done.wait [#allocation9], 2048  }
  0x35   :  { %3263 = vsyncadd [#allocation9], 4294965248  ;;  %vm68_vm0 = vcmask 261120   ;;  %v3271_v0 = vmov 0.0   ;;  %s3362_s21 = sld [smem:[#allocation4]]  ;;  %s3381_s5 = sld [smem:[#allocation4 + $0x1]]  ;;  %v160_v61 = vlaneseq }
  0x36   :  { %258 = vmatprep.mubr.f32.mxu1 %v3271_v0  ;;  %69 = vst.msk [vmem:[#allocation2] sm:$0xff] %vm68_vm0, %v3271_v0  ;;  %s3364_s22 = sld [smem:[#allocation4 + $0x80]]  ;;  %70 = vst.msk [vmem:[#allocation2 + $0x8] sm:$0xff] %vm68_vm0, %v3271_v0  ;;  %657 = vmatprep.mubr.f32.mxu0 %v3271_v0  ;;  %s3383_s23 = sld [smem:[#allocation4 + $0x81]]  ;;  %v151_v1 = vld [vmem:[#allocation5 + $0x8] sm:$0xff]  ;;  %v153_v2 = vld [vmem:[#allocation5 + $0x18] sm:$0xff] }
  0x37   :  { %71 = vst.msk [vmem:[#allocation2 + $0x10] sm:$0xff] %vm68_vm0, %v3271_v0  ;;  %72 = vst.msk [vmem:[#allocation2 + $0x18] sm:$0xff] %vm68_vm0, %v3271_v0  ;;  %s3385_s24 = sld [smem:[#allocation4 + $0x2]]  ;;  %s3389_s26 = sld [smem:[#allocation4 + $0x3]]  ;;  %v150_v3 = vld [vmem:[#allocation5] sm:$0xff]  ;;  %vm80_vm1 = vcmask 253952   ;;  %v2737_v4 = vpack.c.bf16 %v153_v2, %v151_v1 }
  0x38   :  { %73 = vst.msk [vmem:[#allocation2 + $0x20] sm:$0xff] %vm68_vm0, %v3271_v0  ;;  %74 = vst.msk [vmem:[#allocation2 + $0x28] sm:$0xff] %vm68_vm0, %v3271_v0  ;;  %s3387_s25 = sld [smem:[#allocation4 + $0x82]]  ;;  %s3391_s27 = sld [smem:[#allocation4 + $0x83]]  ;;  %v152_v5 = vld [vmem:[#allocation5 + $0x10] sm:$0xff]  ;;  %v155_v6 = vld [vmem:[#allocation5 + $0x28] sm:$0xff] }
  0x39   :  { %75 = vst.msk [vmem:[#allocation2 + $0x30] sm:$0xff] %vm68_vm0, %v3271_v0  ;;  %76 = vst.msk [vmem:[#allocation2 + $0x38] sm:$0xff] %vm68_vm0, %v3271_v0  ;;  %s3393_s28 = sld [smem:[#allocation4 + $0x4]]  ;;  %s3397_s30 = sld [smem:[#allocation4 + $0x5]]  ;;  %v157_v7 = vld [vmem:[#allocation5 + $0x38] sm:$0xff]  ;;  %v2739_v8 = vpack.c.bf16 %v152_v5, %v150_v3  ;;  %v154_v10 = vld [vmem:[#allocation5 + $0x20] sm:$0xff]  ;;  %2738 = vmatprep.subr.bf16.mxu1 %v2737_v4 }
  0x3a   :  { %s3395_s29 = sld [smem:[#allocation4 + $0x84]]  ;;  %s3399_s11 = sld [smem:[#allocation4 + $0x85]]  ;;  %v2741_v9 = vpack.c.bf16 %v157_v7, %v155_v6  ;;  %v156_v11 = vld [vmem:[#allocation5 + $0x30] sm:$0xff]  ;;  %v308_v14 = vld [vmem:[%s4043_s3 + $0x8] sm:$0xff]  ;;  %v310_v15 = vld [vmem:[%s4043_s3 + $0x18] sm:$0xff]  ;;  %v3591_v62 = vshrl.u32 %v160_v61, 7 }
  0x3b   :  { %s78_s14 = scalar_lea.vmem %s4041_s1, %s3362_s21  ;;  %s87_s20 = scalar_lea.vmem %s4041_s1, %s3381_s5  ;;  %2740 = vmatpush1.bf16.msra.mxu1 %v2739_v8  ;;  %v2743_v16 = vpack.c.bf16 %v156_v11, %v154_v10  ;;  %v3433_v17 = vpack.c.bf16 %v310_v15, %v308_v14  ;;  %v307_v18 = vld [vmem:[%s4043_s3] sm:$0xff]  ;;  %v309_v19 = vld [vmem:[%s4043_s3 + $0x10] sm:$0xff]  ;;  %v312_v25 = vld [vmem:[%s4043_s3 + $0x28] sm:$0xff]  ;;  %vm323_vm2 = vcmask 523264   ;;  %vm3275_vm3 = vmmov 0  }
  0x3c   :  { %s83_s17 = scalar_lea.vmem %s4041_s1, %s3364_s22  ;;  %s91_s10 = scalar_lea.vmem %s4041_s1, %s3383_s23  ;;  %v79_v12 = vld [vmem:[%s78_s14] sm:$0x1]  ;;  %2742 = vmatprep.subr.bf16.mxu1 %v2741_v9  ;;  %v3449_v21 = vpack.c.bf16 %v309_v19, %v307_v18  ;;  %v314_v26 = vld [vmem:[%s4043_s3 + $0x38] sm:$0xff]  ;;  %v313_v29 = vld [vmem:[%s4043_s3 + $0x30] sm:$0xff]  ;;  %v166_v63 = vsub.s32 1, %v3591_v62  ;;  %v162_v3 = vsub.s32 0, %v3591_v62 }
  0x3d   :  { %s95_s12 = scalar_lea.vmem %s4041_s1, %s3385_s24  ;;  %81 = vst.msk [vmem:[#allocation2] sm:$0x1] %vm80_vm1, %v79_v12  ;;  %v84_v13 = vld [vmem:[%s83_s17] sm:$0x1]  ;;  %s103_s21 = scalar_lea.vmem %s4041_s1, %s3389_s26  ;;  %2778 = vmatprep.subr.bf16.mxu0 %v3433_v17  ;;  %v3475_v28 = vpack.c.bf16 %v314_v26, %v312_v25  ;;  %v316_v34 = vld [vmem:[%s4043_s3 + $0x48] sm:$0xff]  ;;  %v318_v36 = vld [vmem:[%s4043_s3 + $0x58] sm:$0xff] }
  0x3e   :  { %s99_s16 = scalar_lea.vmem %s4041_s1, %s3387_s25  ;;  %85 = vst.msk [vmem:[#allocation2 + $0x1] sm:$0x1] %vm80_vm1, %v84_v13  ;;  %v88_v20 = vld [vmem:[%s87_s20] sm:$0x1]  ;;  %s107_s15 = scalar_lea.vmem %s4041_s1, %s3391_s27  ;;  %2780 = vmatpush1.bf16.msra.mxu0 %v3449_v21  ;;  %v3508_v38 = vpack.c.bf16 %v318_v36, %v316_v34  ;;  %v317_v39 = vld [vmem:[%s4043_s3 + $0x50] sm:$0xff]  ;;  %v320_v43 = vld [vmem:[%s4043_s3 + $0x68] sm:$0xff] }
  0x3f   :  { %89 = vst.msk [vmem:[#allocation2 + $0x8] sm:$0x1] %vm80_vm1, %v88_v20  ;;  %v92_v22 = vld [vmem:[%s91_s10] sm:$0x1]  ;;  %s111_s20 = scalar_lea.vmem %s4041_s1, %s3393_s28  ;;  %s3472_s25 = sld [smem:[#allocation4 + $0x6]]  ;;  %2744 = vmatpush1.bf16.msra.mxu1 %v2743_v16  ;;  %2782 = vmatprep.subr.bf16.mxu0 %v3475_v28  ;;  %v322_v44 = vld [vmem:[%s4043_s3 + $0x78] sm:$0xff] }
  0x40   :  { %v96_v23 = vld [vmem:[%s95_s12] sm:$0x1]  ;;  %s115_s0 = scalar_lea.vmem %s4041_s1, %s3395_s29  ;;  %93 = vst.msk [vmem:[#allocation2 + $0x9] sm:$0x1] %vm80_vm1, %v92_v22  ;;  %s119_s19 = scalar_lea.vmem %s4041_s1, %s3397_s30  ;;  %2746 = vmatprep.subr.bf16.mxu1 %v3433_v17  ;;  %v3534_v48 = vpack.c.bf16 %v322_v44, %v320_v43  ;;  %v321_v50 = vld [vmem:[%s4043_s3 + $0x70] sm:$0xff]  ;;  %vm2475_vm4 = vcmask 33792  }
  0x41   :  { %v100_v24 = vld [vmem:[%s99_s16] sm:$0x1]  ;;  %97 = vst.msk [vmem:[#allocation2 + $0x10] sm:$0x1] %vm80_vm1, %v96_v23  ;;  %s123_s5 = scalar_lea.vmem %s4041_s1, %s3399_s11  ;;  %s2522_s24 = sld [smem:[#allocation4 + $0x7]] }
  0x42   :  { %101 = vst.msk [vmem:[#allocation2 + $0x11] sm:$0x1] %vm80_vm1, %v100_v24  ;;  %v311_v27 = vld [vmem:[%s4043_s3 + $0x20] sm:$0xff]  ;;  %s2523_s17 = sld [smem:[#allocation4 + $0x87]]  ;;  %s3273_s26 = smov 32  }
  0x43   :  { %v104_v30 = vld [vmem:[%s103_s21] sm:$0x1]  ;;  %v3495_v35 = vpack.c.bf16 %v313_v29, %v311_v27 }
  0x44   :  { %v108_v31 = vld [vmem:[%s107_s15] sm:$0x1]  ;;  %105 = vst.msk [vmem:[#allocation2 + $0x18] sm:$0x1] %vm80_vm1, %v104_v30 }
  0x45   :  { %109 = vst.msk [vmem:[#allocation2 + $0x19] sm:$0x1] %vm80_vm1, %v108_v31  ;;  %v112_v32 = vld [vmem:[%s111_s20] sm:$0x1]  ;;  %s3505_s20 = sld [smem:[#allocation4 + $0x86]]  ;;  %2784 = vmatpush1.bf16.msra.mxu0 %v3495_v35  ;;  %s127_s14 = scalar_lea.vmem %s4041_s1, %s3472_s25 }
  0x46   :  { %v116_v33 = vld [vmem:[%s115_s0] sm:$0x1]  ;;  %113 = vst.msk [vmem:[#allocation2 + $0x20] sm:$0x1] %vm80_vm1, %v112_v32  ;;  %2786 = vmatprep.subr.bf16.mxu0 %v3508_v38 }
  0x47   :  { %117 = vst.msk [vmem:[#allocation2 + $0x21] sm:$0x1] %vm80_vm1, %v116_v33  ;;  %v315_v37 = vld [vmem:[%s4043_s3 + $0x40] sm:$0xff]  ;;  %v143_v45 = vld [vmem:[#allocation2 + $0x8] sm:$0xff]  ;;  %s135_s30 = scalar_lea.vmem %s4041_s1, %s2522_s24 }
  0x48   :  { %v120_v40 = vld [vmem:[%s119_s19] sm:$0x1]  ;;  %v3530_v46 = vpack.c.bf16 %v317_v39, %v315_v37  ;;  %s139_s18 = scalar_lea.vmem %s4041_s1, %s2523_s17 }
  0x49   :  { %v124_v41 = vld [vmem:[%s123_s5] sm:$0x1]  ;;  %121 = vst.msk [vmem:[#allocation2 + $0x28] sm:$0x1] %vm80_vm1, %v120_v40  ;;  %v144_v52 = vld [vmem:[#allocation2 + $0x10] sm:$0xff] }
  0x4a   :  { %v142_v42 = vld [vmem:[#allocation2] sm:$0xff]  ;;  %125 = vst.msk [vmem:[#allocation2 + $0x29] sm:$0x1] %vm80_vm1, %v124_v41  ;;  %2788 = vmatpush1.bf16.msra.mxu0 %v3530_v46 }
  0x4b   :  { %2524 = vmatmul.mubr.msk.f32.vlgmr.msra.gmra.mrb[0].mxu1 %vm68_vm0, %v142_v42  ;;  %v128_v47 = vld [vmem:[%s127_s14] sm:$0x1]  ;;  %s131_s23 = scalar_lea.vmem %s4041_s1, %s3505_s20  ;;  %2790 = vmatprep.subr.bf16.mxu0 %v3534_v48 }
  0x4c   :  { %2748 = vmatpush1.bf16.msra.mxu1 %v3449_v21  ;;  %264 = vmatprep.mubr.f32.mxu1 %v3271_v0  ;;  %129 = vst.msk [vmem:[#allocation2 + $0x30] sm:$0x1] %vm80_vm1, %v128_v47  ;;  %v319_v49 = vld [vmem:[%s4043_s3 + $0x60] sm:$0xff]  ;;  %v145_v56 = vld [vmem:[#allocation2 + $0x18] sm:$0xff] }
  0x4d   :  { %2750 = vmatprep.subr.bf16.mxu1 %v3475_v28  ;;  %v132_v51 = vld [vmem:[%s131_s23] sm:$0x1]  ;;  %v3552_v53 = vpack.c.bf16 %v321_v50, %v319_v49 }
  0x4e   :  { %133 = vst.msk [vmem:[#allocation2 + $0x31] sm:$0x1] %vm80_vm1, %v132_v51  ;;  %v136_v54 = vld [vmem:[%s135_s30] sm:$0x1] }
  0x4f   :  { %2525 = vmatmul.mubr.msk.f32.gmra.mrb[2].mxu1 %vm68_vm0, %v143_v45  ;;  %137 = vst.msk [vmem:[#allocation2 + $0x38] sm:$0x1] %vm80_vm1, %v136_v54  ;;  %v140_v55 = vld [vmem:[%s139_s18] sm:$0x1]  ;;  %2792 = vmatpush1.bf16.msra.mxu0 %v3552_v53 }
  0x50   :  { %270 = vmatprep.mubr.f32.mxu1 %v3271_v0  ;;  %2752 = vmatpush1.bf16.msra.mxu1 %v3495_v35  ;;  %141 = vst.msk [vmem:[#allocation2 + $0x39] sm:$0x1] %vm80_vm1, %v140_v55  ;;  %v146_v57 = vld [vmem:[#allocation2 + $0x20] sm:$0xff] }
  0x51   :  { %2754 = vmatprep.subr.bf16.mxu1 %v3508_v38  ;;  %2810 = vmatprep.subr.bf16.mxu0 %v3433_v17  ;;  %v147_v58 = vld [vmem:[#allocation2 + $0x28] sm:$0xff]  ;;  %v158_v1 = vld [vmem:[%s4044_s4] sm:$0x3]  ;;  %s3272_s4 = smov 64  }
  0x52   :  { %v167_v2 = vrot.slane %v158_v1, %v166_v63  ;;  %v163_v7 = vrot.slane %v158_v1, %v162_v3 }
  0x53   :  { %2526 = vmatmul.mubr.msk.f32.gmra.mrb[4].mxu1 %vm68_vm0, %v144_v52 }
  0x54   :  { %276 = vmatprep.mubr.f32.mxu1 %v3271_v0  ;;  %2756 = vmatpush1.bf16.msra.mxu1 %v3530_v46 }
  0x55   :  { %2758 = vmatprep.subr.bf16.mxu1 %v3534_v48  ;;  %v148_v59 = vld [vmem:[#allocation2 + $0x30] sm:$0xff] }
  0x57   :  { %2527 = vmatmul.mubr.msk.f32.gmra.mrb[6].mxu1 %vm68_vm0, %v145_v56  ;;  %v149_v60 = vld [vmem:[#allocation2 + $0x38] sm:$0xff] }
  0x58   :  { %282 = vmatprep.mubr.f32.mxu1 %v3271_v0  ;;  %2760 = vmatpush1.bf16.msra.mxu1 %v3552_v53 }
  0x59   :  { %2762 = vmatprep.subr.bf16.mxu1 %v3433_v17 }
  0x5b   :  { %2528 = vmatmul.mubr.msk.f32.gmra.mrb[8].mxu1 %vm68_vm0, %v146_v57 }
  0x5c   :  { %288 = vmatprep.mubr.f32.mxu1 %v3271_v0 }
  0x5f   :  { %2529 = vmatmul.mubr.msk.f32.gmra.mrb[10].mxu1 %vm68_vm0, %v147_v58 }
  0x60   :  { %294 = vmatprep.mubr.f32.mxu1 %v3271_v0 }
  0x63   :  { %2530 = vmatmul.mubr.msk.f32.gmra.mrb[12].mxu1 %vm68_vm0, %v148_v59 }
  0x64   :  { %300 = vmatprep.mubr.f32.mxu1 %v3271_v0 }
  0x67   :  { %2531 = vmatmul.mubr.msk.f32.gmra.mrb[14].mxu1 %vm68_vm0, %v149_v60 }
  0x68   :  { %391 = vmatprep.mubr.f32.mxu1 %v3271_v0 }
  0x6b   :  { %392 = vmatmul.mubr.f32.vlgmr.msra.gmra.mrb[16].mxu1 %v3271_v0 }
  0x6c   :  { %2764 = vmatpush1.bf16.msra.mxu1 %v3449_v21  ;;  %524 = vmatprep.mubr.f32.mxu1 %v3271_v0 }
  0x6d   :  { %2766 = vmatprep.subr.bf16.mxu1 %v3475_v28 }
  0x70   :  { %2768 = vmatpush1.bf16.msra.mxu1 %v3495_v35 }
  0x71   :  { %2770 = vmatprep.subr.bf16.mxu1 %v3508_v38 }
  0x74   :  { %2772 = vmatpush1.bf16.msra.mxu1 %v3530_v46 }
  0x75   :  { %2774 = vmatprep.subr.bf16.mxu1 %v3534_v48 }
  0x78   :  { %2776 = vmatpush1.bf16.msra.mxu1 %v3552_v53 }
  0x79   :  { %2794 = vmatprep.subr.bf16.mxu1 %v3433_v17 }
 0x11e   :  { %v260_v4 = vpop.f32.mrb[0].mxu1 }
 0x11f   :  { %v262_v5 = vpop.f32.mrb[1].mxu1  ;;  %v261_v40 = vadd.f32 %v260_v4, %v163_v7 }
 0x120   :  { %v3600_v6 = vadd.f32 %v262_v5, %v167_v2 }
 0x122   :  { %v266_v8 = vpop.f32.mrb[2].mxu1 }
 0x123   :  { %v3604_v9 = vadd.f32 %v266_v8, %v163_v7  ;;  %v268_v10 = vpop.f32.mrb[3].mxu1 }
 0x124   :  { %v3606_v11 = vadd.f32 %v268_v10, %v167_v2 }
 0x126   :  { %v272_v12 = vpop.f32.mrb[4].mxu1 }
 0x127   :  { %v3608_v13 = vadd.f32 %v272_v12, %v163_v7  ;;  %v274_v14 = vpop.f32.mrb[5].mxu1 }
 0x128   :  { %v3610_v15 = vadd.f32 %v274_v14, %v167_v2 }
 0x12a   :  { %v278_v16 = vpop.f32.mrb[6].mxu1 }
 0x12b   :  { %v3612_v18 = vadd.f32 %v278_v16, %v163_v7  ;;  %v280_v19 = vpop.f32.mrb[7].mxu1 }
 0x12c   :  { %v3614_v20 = vadd.f32 %v280_v19, %v167_v2 }
 0x12e   :  { %v284_v22 = vpop.f32.mrb[8].mxu1 }
 0x12f   :  { %v3616_v23 = vadd.f32 %v284_v22, %v163_v7  ;;  %v286_v24 = vpop.f32.mrb[9].mxu1 }
 0x130   :  { %v3618_v25 = vadd.f32 %v286_v24, %v167_v2 }
 0x132   :  { %v290_v26 = vpop.f32.mrb[10].mxu1 }
 0x133   :  { %v3620_v27 = vadd.f32 %v290_v26, %v163_v7  ;;  %v292_v29 = vpop.f32.mrb[11].mxu1 }
 0x134   :  { %v3622_v30 = vadd.f32 %v292_v29, %v167_v2 }
 0x136   :  { %v296_v31 = vpop.f32.mrb[12].mxu1 }
 0x137   :  { %v3624_v32 = vadd.f32 %v296_v31, %v163_v7  ;;  %v298_v33 = vpop.f32.mrb[13].mxu1 }
 0x138   :  { %v3626_v34 = vadd.f32 %v298_v33, %v167_v2 }
 0x13a   :  { %v302_v36 = vpop.f32.mrb[14].mxu1 }
 0x13b   :  { %v3628_v37 = vadd.f32 %v302_v36, %v163_v7  ;;  %v304_v39 = vpop.f32.mrb[15].mxu1 }
 0x13c   :  { %v305_v41 = vadd.f32 %v304_v39, %v167_v2 }
 0x13e   :  { %v393_v42 = vpop.f32.mrb[16].mxu1 }
 0x13f   :  { %v398_v43 = vadd.f32 %v393_v42, %v261_v40  ;;  %v395_v44 = vpop.f32.mrb[17].mxu1 }
 0x140   :  { %v423_v45 = vadd.f32 %v395_v44, %v305_v41 }
 0x141   :  { %2980 = vtanh.f32 %v398_v43  ;;  %v2532_v50 = vmul.f32 -1.442695, %v398_v43 }
 0x142   :  { %2982 = vtanh.f32 %v423_v45  ;;  %v2533_v51 = vmul.f32 -1.442695, %v423_v45 }
 0x143   :  { %2984 = vpow2.f32 %v2532_v50 }
 0x144   :  { %2986 = vpow2.f32 %v2533_v51 }
 0x14b   :  { %v2981_v47 = vpop.eup %2980 }
 0x14c   :  { %408 = vrot.lane.b32.xlu0 %v2981_v47, %s3272_s4  ;;  %v2983_v49 = vpop.eup %2982 }
 0x14d   :  { %v2985_v52 = vpop.eup %2984 }
 0x14e   :  { %v402_v54 = vadd.f32 1.0, %v2985_v52  ;;  %v2987_v55 = vpop.eup %2986 }
 0x14f   :  { %v427_v56 = vadd.f32 1.0, %v2987_v55 }
 0x150   :  { %433 = vrot.lane.b32.xlu0 %v2983_v49, %s3272_s4  ;;  %2988 = vrcp.f32 %v402_v54 }
 0x151   :  { %2990 = vrcp.f32 %v427_v56 }
 0x15a   :  { %v2989_v57 = vpop.eup %2988 }
 0x15b   :  { %v2991_v60 = vpop.eup %2990  ;;  %v406_v2 = vmul.f32 0.0, %v2989_v57 }
 0x15c   :  { %v431_v7 = vmul.f32 0.0, %v2991_v60 }
 0x1be   :  { %v409_v58 = vpop.permute.xlu0 %408 }
 0x1bf   :  { %v411_v59 = vmul.f32 %v2989_v57, %v409_v58 }
 0x1c1   :  { %413 = vrot.lane.b32.xlu1 %v411_v59, %s3273_s26 }
 0x1c2   :  { %v434_v61 = vpop.permute.xlu0 %433 }
 0x1c3   :  { %v436_v1 = vmul.f32 %v2991_v60, %v434_v61 }
 0x1c5   :  { %438 = vrot.lane.b32.xlu1 %v436_v1, %s3273_s26 }
 0x233   :  { %v414_v4 = vpop.permute.xlu1 %413 }
 0x234   :  { %v416_v5 = vadd.f32 %v414_v4, %v406_v2 }
 0x236   :  { %2992 = vtanh.f32 %v416_v5 }
 0x237   :  { %v439_v8 = vpop.permute.xlu1 %438 }
 0x238   :  { %v441_v10 = vadd.f32 %v439_v8, %v431_v7 }
 0x23a   :  { %2994 = vtanh.f32 %v441_v10 }
 0x240   :  { %v2993_v12 = vpop.eup %2992 }
 0x241   :  { %419 = vrot.lane.b32.xlu0 %v2993_v12, %s3272_s4 }
 0x244   :  { %v2995_v14 = vpop.eup %2994 }
 0x245   :  { %444 = vrot.lane.b32.xlu1 %v2995_v14, %s3272_s4 }
 0x2b3   :  { %v420_v16 = vpop.permute.xlu0 %419 }
 0x2b4   :  { %v422_v19 = vmul.f32 %v2989_v57, %v420_v16 }
 0x2b6   :  { %449 = vrot.lane.b32.xlu0 %v422_v19, %s3273_s26 }
 0x2b7   :  { %v445_v22 = vpop.permute.xlu1 %444 }
 0x2b8   :  { %v447_v24 = vmul.f32 %v2991_v60, %v445_v22 }
 0x2ba   :  { %453 = vrot.lane.b32.xlu1 %v447_v24, %s3272_s4 }
 0x328   :  { %v3638_v26 = vpop.permute.xlu0 %449 }
 0x32c   :  { %v3640_v29 = vpop.permute.xlu1 %453 }
 0x32d   :  { %v456_v31 = vsel %vm68_vm0, %v3638_v26, %v3640_v29 }
 0x32e   :  { %2534 = vmatmul.mubr.msk.f32.vlgmr.msra.gmra.mrb[18].mxu1 %vm323_vm2, %v456_v31 }
 0x32f   :  { %2796 = vmatpush1.bf16.msra.mxu1 %v3449_v21  ;;  %790 = vmatprep.mubr.f32.mxu1 %v3271_v0 }
 0x330   :  { %2798 = vmatprep.subr.bf16.mxu1 %v3475_v28 }
 0x333   :  { %2800 = vmatpush1.bf16.msra.mxu1 %v3495_v35 }
 0x334   :  { %2802 = vmatprep.subr.bf16.mxu1 %v3508_v38 }
 0x337   :  { %2804 = vmatpush1.bf16.msra.mxu1 %v3530_v46 }
 0x338   :  { %2806 = vmatprep.subr.bf16.mxu1 %v3534_v48 }
 0x33b   :  { %2808 = vmatpush1.bf16.msra.mxu1 %v3552_v53 }
 0x33c   :  { %2826 = vmatprep.subr.bf16.mxu1 %v3433_v17 }
 0x401   :  { %v526_v33 = vpop.f32.mrb[18].mxu1 }
 0x402   :  { %v531_v36 = vadd.f32 %v526_v33, %v3604_v9  ;;  %v528_v39 = vpop.f32.mrb[19].mxu1 }
 0x403   :  { %v556_v40 = vadd.f32 %v528_v39, %v3626_v34 }
 0x404   :  { %2996 = vtanh.f32 %v531_v36  ;;  %v2535_v43 = vmul.f32 -1.442695, %v531_v36 }
 0x405   :  { %2998 = vtanh.f32 %v556_v40  ;;  %v2536_v44 = vmul.f32 -1.442695, %v556_v40 }
 0x406   :  { %3000 = vpow2.f32 %v2535_v43 }
 0x407   :  { %3002 = vpow2.f32 %v2536_v44 }
 0x40e   :  { %v2997_v41 = vpop.eup %2996 }
 0x40f   :  { %v2999_v42 = vpop.eup %2998  ;;  %541 = vrot.lane.b32.xlu0 %v2997_v41, %s3272_s4 }
 0x410   :  { %566 = vrot.lane.b32.xlu1 %v2999_v42, %s3272_s4  ;;  %v3001_v45 = vpop.eup %3000 }
 0x411   :  { %v3003_v47 = vpop.eup %3002  ;;  %v535_v49 = vadd.f32 1.0, %v3001_v45 }
 0x412   :  { %v560_v50 = vadd.f32 1.0, %v3003_v47 }
 0x413   :  { %3004 = vrcp.f32 %v535_v49 }
 0x414   :  { %3006 = vrcp.f32 %v560_v50 }
 0x41d   :  { %v3005_v9 = vpop.eup %3004 }
 0x41e   :  { %v3007_v51 = vpop.eup %3006  ;;  %v539_v56 = vmul.f32 %v3005_v9, %v416_v5 }
 0x41f   :  { %v564_v58 = vmul.f32 %v3007_v51, %v441_v10 }
 0x481   :  { %v542_v34 = vpop.permute.xlu0 %541 }
 0x482   :  { %v544_v52 = vmul.f32 %v3005_v9, %v542_v34  ;;  %v567_v54 = vpop.permute.xlu1 %566 }
 0x483   :  { %v569_v55 = vmul.f32 %v3007_v51, %v567_v54 }
 0x484   :  { %546 = vrot.lane.b32.xlu0 %v544_v52, %s3273_s26 }
 0x485   :  { %571 = vrot.lane.b32.xlu1 %v569_v55, %s3273_s26 }
 0x4f6   :  { %v547_v57 = vpop.permute.xlu0 %546 }
 0x4f7   :  { %v549_v59 = vadd.f32 %v547_v57, %v539_v56  ;;  %v572_v60 = vpop.permute.xlu1 %571 }
 0x4f8   :  { %v574_v61 = vadd.f32 %v572_v60, %v564_v58 }
 0x4f9   :  { %3008 = vtanh.f32 %v549_v59 }
 0x4fa   :  { %3010 = vtanh.f32 %v574_v61 }
 0x503   :  { %v3009_v1 = vpop.eup %3008 }
 0x504   :  { %v3011_v2 = vpop.eup %3010  ;;  %552 = vrot.lane.b32.xlu0 %v3009_v1, %s3272_s4 }
 0x505   :  { %577 = vrot.lane.b32.xlu1 %v3011_v2, %s3272_s4 }
 0x576   :  { %v553_v4 = vpop.permute.xlu0 %552 }
 0x577   :  { %v555_v7 = vmul.f32 %v3005_v9, %v553_v4  ;;  %v578_v8 = vpop.permute.xlu1 %577 }
 0x578   :  { %v580_v12 = vmul.f32 %v3007_v51, %v578_v8 }
 0x579   :  { %582 = vrot.lane.b32.xlu0 %v555_v7, %s3273_s26 }
 0x57a   :  { %586 = vrot.lane.b32.xlu1 %v580_v12, %s3272_s4 }
 0x5eb   :  { %v3665_v5 = vpop.permute.xlu0 %582 }
 0x5ec   :  { %v3667_v10 = vpop.permute.xlu1 %586 }
 0x5ed   :  { %v589_v14 = vsel %vm68_vm0, %v3665_v5, %v3667_v10 }
 0x5ee   :  { %2537 = vmatmul.mubr.msk.f32.vlgmr.msra.gmra.mrb[0].mxu0 %vm323_vm2, %v589_v14 }
 0x5ef   :  { %2812 = vmatpush1.bf16.msra.mxu0 %v3449_v21  ;;  %923 = vmatprep.mubr.f32.mxu0 %v3271_v0 }
 0x5f0   :  { %2814 = vmatprep.subr.bf16.mxu0 %v3475_v28 }
 0x5f3   :  { %2816 = vmatpush1.bf16.msra.mxu0 %v3495_v35 }
 0x5f4   :  { %2818 = vmatprep.subr.bf16.mxu0 %v3508_v38 }
 0x5f7   :  { %2820 = vmatpush1.bf16.msra.mxu0 %v3530_v46 }
 0x5f8   :  { %2822 = vmatprep.subr.bf16.mxu0 %v3534_v48 }
 0x5fb   :  { %2824 = vmatpush1.bf16.msra.mxu0 %v3552_v53 }
 0x5fc   :  { %2842 = vmatprep.subr.bf16.mxu0 %v3433_v17 }
 0x6c1   :  { %v659_v16 = vpop.f32.mrb[0].mxu0 }
 0x6c2   :  { %v664_v19 = vadd.f32 %v659_v16, %v3608_v13  ;;  %v661_v22 = vpop.f32.mrb[1].mxu0 }
 0x6c3   :  { %v689_v24 = vadd.f32 %v661_v22, %v3622_v30 }
 0x6c4   :  { %3012 = vtanh.f32 %v664_v19  ;;  %v2538_v36 = vmul.f32 -1.442695, %v664_v19 }
 0x6c5   :  { %3014 = vtanh.f32 %v689_v24  ;;  %v2539_v39 = vmul.f32 -1.442695, %v689_v24 }
 0x6c6   :  { %3016 = vpow2.f32 %v2538_v36 }
 0x6c7   :  { %3018 = vpow2.f32 %v2539_v39 }
 0x6ce   :  { %v3013_v31 = vpop.eup %3012 }
 0x6cf   :  { %v3015_v33 = vpop.eup %3014  ;;  %674 = vrot.lane.b32.xlu0 %v3013_v31, %s3272_s4 }
 0x6d0   :  { %699 = vrot.lane.b32.xlu1 %v3015_v33, %s3272_s4  ;;  %v3017_v40 = vpop.eup %3016 }
 0x6d1   :  { %v3019_v41 = vpop.eup %3018  ;;  %v668_v42 = vadd.f32 1.0, %v3017_v40 }
 0x6d2   :  { %v693_v43 = vadd.f32 1.0, %v3019_v41 }
 0x6d3   :  { %3020 = vrcp.f32 %v668_v42 }
 0x6d4   :  { %3022 = vrcp.f32 %v693_v43 }
 0x6dd   :  { %v3021_v13 = vpop.eup %3020 }
 0x6de   :  { %v3023_v44 = vpop.eup %3022  ;;  %v672_v50 = vmul.f32 %v3021_v13, %v549_v59 }
 0x6df   :  { %v697_v34 = vmul.f32 %v3023_v44, %v574_v61 }
 0x741   :  { %v675_v30 = vpop.permute.xlu0 %674 }
 0x742   :  { %v677_v45 = vmul.f32 %v3021_v13, %v675_v30  ;;  %v700_v47 = vpop.permute.xlu1 %699 }
 0x743   :  { %v702_v49 = vmul.f32 %v3023_v44, %v700_v47 }
 0x744   :  { %679 = vrot.lane.b32.xlu0 %v677_v45, %s3273_s26 }
 0x745   :  { %704 = vrot.lane.b32.xlu1 %v702_v49, %s3273_s26 }
 0x7b6   :  { %v680_v9 = vpop.permute.xlu0 %679 }
 0x7b7   :  { %v682_v51 = vadd.f32 %v680_v9, %v672_v50  ;;  %v705_v52 = vpop.permute.xlu1 %704 }
 0x7b8   :  { %v707_v54 = vadd.f32 %v705_v52, %v697_v34 }
 0x7b9   :  { %3024 = vtanh.f32 %v682_v51 }
 0x7ba   :  { %3026 = vtanh.f32 %v707_v54 }
 0x7c3   :  { %v3025_v55 = vpop.eup %3024 }
 0x7c4   :  { %v3027_v56 = vpop.eup %3026  ;;  %685 = vrot.lane.b32.xlu0 %v3025_v55, %s3272_s4 }
 0x7c5   :  { %710 = vrot.lane.b32.xlu1 %v3027_v56, %s3272_s4 }
 0x836   :  { %v686_v57 = vpop.permute.xlu0 %685 }
 0x837   :  { %v688_v58 = vmul.f32 %v3021_v13, %v686_v57  ;;  %v711_v60 = vpop.permute.xlu1 %710 }
 0x838   :  { %v713_v1 = vmul.f32 %v3023_v44, %v711_v60 }
 0x839   :  { %715 = vrot.lane.b32.xlu0 %v688_v58, %s3273_s26 }
 0x83a   :  { %719 = vrot.lane.b32.xlu1 %v713_v1, %s3272_s4 }
 0x8ab   :  { %v3692_v59 = vpop.permute.xlu0 %715 }
 0x8ac   :  { %v3694_v61 = vpop.permute.xlu1 %719 }
 0x8ad   :  { %v722_v2 = vsel %vm68_vm0, %v3692_v59, %v3694_v61 }
 0x8ae   :  { %2540 = vmatmul.mubr.msk.f32.vlgmr.msra.gmra.mrb[20].mxu1 %vm323_vm2, %v722_v2 }
 0x8af   :  { %2828 = vmatpush1.bf16.msra.mxu1 %v3449_v21  ;;  %1056 = vmatprep.mubr.f32.mxu1 %v3271_v0 }
 0x8b0   :  { %2830 = vmatprep.subr.bf16.mxu1 %v3475_v28 }
 0x8b3   :  { %2832 = vmatpush1.bf16.msra.mxu1 %v3495_v35 }
 0x8b4   :  { %2834 = vmatprep.subr.bf16.mxu1 %v3508_v38 }
 0x8b7   :  { %2836 = vmatpush1.bf16.msra.mxu1 %v3530_v46 }
 0x8b8   :  { %2838 = vmatprep.subr.bf16.mxu1 %v3534_v48 }
 0x8bb   :  { %2840 = vmatpush1.bf16.msra.mxu1 %v3552_v53 }
 0x8bc   :  { %2858 = vmatprep.subr.bf16.mxu1 %v3433_v17 }
 0x981   :  { %v792_v4 = vpop.f32.mrb[20].mxu1 }
 0x982   :  { %v797_v7 = vadd.f32 %v792_v4, %v3612_v18  ;;  %v794_v8 = vpop.f32.mrb[21].mxu1 }
 0x983   :  { %v822_v12 = vadd.f32 %v794_v8, %v3618_v25 }
 0x984   :  { %3028 = vtanh.f32 %v797_v7  ;;  %v2541_v19 = vmul.f32 -1.442695, %v797_v7 }
 0x985   :  { %3030 = vtanh.f32 %v822_v12  ;;  %v2542_v22 = vmul.f32 -1.442695, %v822_v12 }
 0x986   :  { %3032 = vpow2.f32 %v2541_v19 }
 0x987   :  { %3034 = vpow2.f32 %v2542_v22 }
 0x98e   :  { %v3029_v14 = vpop.eup %3028 }
 0x98f   :  { %v3031_v16 = vpop.eup %3030  ;;  %807 = vrot.lane.b32.xlu0 %v3029_v14, %s3272_s4 }
 0x990   :  { %832 = vrot.lane.b32.xlu1 %v3031_v16, %s3272_s4  ;;  %v3033_v24 = vpop.eup %3032 }
 0x991   :  { %v3035_v17 = vpop.eup %3034  ;;  %v801_v31 = vadd.f32 1.0, %v3033_v24 }
 0x992   :  { %v826_v33 = vadd.f32 1.0, %v3035_v17 }
 0x993   :  { %3036 = vrcp.f32 %v801_v31 }
 0x994   :  { %3038 = vrcp.f32 %v826_v33 }
 0x99d   :  { %v3037_v18 = vpop.eup %3036 }
 0x99e   :  { %v3039_v36 = vpop.eup %3038  ;;  %v805_v42 = vmul.f32 %v3037_v18, %v682_v51 }
 0x99f   :  { %v830_v13 = vmul.f32 %v3039_v36, %v707_v54 }
 0xa01   :  { %v808_v25 = vpop.permute.xlu0 %807 }
 0xa02   :  { %v810_v39 = vmul.f32 %v3037_v18, %v808_v25  ;;  %v833_v40 = vpop.permute.xlu1 %832 }
 0xa03   :  { %v835_v41 = vmul.f32 %v3039_v36, %v833_v40 }
 0xa04   :  { %812 = vrot.lane.b32.xlu0 %v810_v39, %s3273_s26 }
 0xa05   :  { %837 = vrot.lane.b32.xlu1 %v835_v41, %s3273_s26 }
 0xa76   :  { %v813_v43 = vpop.permute.xlu0 %812 }
 0xa77   :  { %v815_v30 = vadd.f32 %v813_v43, %v805_v42  ;;  %v838_v44 = vpop.permute.xlu1 %837 }
 0xa78   :  { %v840_v45 = vadd.f32 %v838_v44, %v830_v13 }
 0xa79   :  { %3040 = vtanh.f32 %v815_v30 }
 0xa7a   :  { %3042 = vtanh.f32 %v840_v45 }
 0xa83   :  { %v3041_v47 = vpop.eup %3040 }
 0xa84   :  { %v3043_v49 = vpop.eup %3042  ;;  %818 = vrot.lane.b32.xlu0 %v3041_v47, %s3272_s4 }
 0xa85   :  { %843 = vrot.lane.b32.xlu1 %v3043_v49, %s3272_s4 }
 0xaf6   :  { %v819_v50 = vpop.permute.xlu0 %818 }
 0xaf7   :  { %v821_v9 = vmul.f32 %v3037_v18, %v819_v50  ;;  %v844_v34 = vpop.permute.xlu1 %843 }
 0xaf8   :  { %v846_v52 = vmul.f32 %v3039_v36, %v844_v34 }
 0xaf9   :  { %848 = vrot.lane.b32.xlu0 %v821_v9, %s3273_s26 }
 0xafa   :  { %852 = vrot.lane.b32.xlu1 %v846_v52, %s3272_s4 }
 0xb6b   :  { %v3719_v51 = vpop.permute.xlu0 %848 }
 0xb6c   :  { %v3721_v54 = vpop.permute.xlu1 %852 }
 0xb6d   :  { %v855_v55 = vsel %vm68_vm0, %v3719_v51, %v3721_v54 }
 0xb6e   :  { %2543 = vmatmul.mubr.msk.f32.vlgmr.msra.gmra.mrb[2].mxu0 %vm323_vm2, %v855_v55 }
 0xb6f   :  { %2844 = vmatpush1.bf16.msra.mxu0 %v3449_v21  ;;  %1189 = vmatprep.mubr.f32.mxu0 %v3271_v0 }
 0xb70   :  { %2846 = vmatprep.subr.bf16.mxu0 %v3475_v28 }
 0xb73   :  { %2848 = vmatpush1.bf16.msra.mxu0 %v3495_v35 }
 0xb74   :  { %2850 = vmatprep.subr.bf16.mxu0 %v3508_v38 }
 0xb77   :  { %2852 = vmatpush1.bf16.msra.mxu0 %v3530_v46 }
 0xb78   :  { %2854 = vmatprep.subr.bf16.mxu0 %v3534_v48 }
 0xb7b   :  { %2856 = vmatpush1.bf16.msra.mxu0 %v3552_v53 }
 0xc41   :  { %v925_v56 = vpop.f32.mrb[2].mxu0 }
 0xc42   :  { %v930_v57 = vadd.f32 %v925_v56, %v3616_v23  ;;  %v927_v58 = vpop.f32.mrb[3].mxu0 }
 0xc43   :  { %v955_v60 = vadd.f32 %v927_v58, %v3614_v20 }
 0xc44   :  { %3044 = vtanh.f32 %v930_v57  ;;  %v2544_v4 = vmul.f32 -1.442695, %v930_v57 }
 0xc45   :  { %3046 = vtanh.f32 %v955_v60  ;;  %v2545_v7 = vmul.f32 -1.442695, %v955_v60 }
 0xc46   :  { %3048 = vpow2.f32 %v2544_v4 }
 0xc47   :  { %3050 = vpow2.f32 %v2545_v7 }
 0xc4e   :  { %v3045_v1 = vpop.eup %3044 }
 0xc4f   :  { %v3047_v2 = vpop.eup %3046  ;;  %940 = vrot.lane.b32.xlu0 %v3045_v1, %s3272_s4 }
 0xc50   :  { %965 = vrot.lane.b32.xlu1 %v3047_v2, %s3272_s4  ;;  %v3049_v8 = vpop.eup %3048 }
 0xc51   :  { %v3051_v12 = vpop.eup %3050  ;;  %v934_v14 = vadd.f32 1.0, %v3049_v8 }
 0xc52   :  { %v959_v16 = vadd.f32 1.0, %v3051_v12 }
 0xc53   :  { %3052 = vrcp.f32 %v934_v14 }
 0xc54   :  { %3054 = vrcp.f32 %v959_v16 }
 0xc5d   :  { %v3053_v23 = vpop.eup %3052 }
 0xc5e   :  { %v3055_v19 = vpop.eup %3054  ;;  %v938_v31 = vmul.f32 %v3053_v23, %v815_v30 }
 0xc5f   :  { %v963_v18 = vmul.f32 %v3055_v19, %v840_v45 }
 0xcc1   :  { %v941_v20 = vpop.permute.xlu0 %940 }
 0xcc2   :  { %v943_v22 = vmul.f32 %v3053_v23, %v941_v20  ;;  %v966_v24 = vpop.permute.xlu1 %965 }
 0xcc3   :  { %v968_v17 = vmul.f32 %v3055_v19, %v966_v24 }
 0xcc4   :  { %945 = vrot.lane.b32.xlu0 %v943_v22, %s3273_s26 }
 0xcc5   :  { %970 = vrot.lane.b32.xlu1 %v968_v17, %s3273_s26 }
 0xd36   :  { %v946_v33 = vpop.permute.xlu0 %945 }
 0xd37   :  { %v948_v25 = vadd.f32 %v946_v33, %v938_v31  ;;  %v971_v36 = vpop.permute.xlu1 %970 }
 0xd38   :  { %v973_v39 = vadd.f32 %v971_v36, %v963_v18 }
 0xd39   :  { %3056 = vtanh.f32 %v948_v25 }
 0xd3a   :  { %3058 = vtanh.f32 %v973_v39 }
 0xd43   :  { %v3057_v40 = vpop.eup %3056 }
 0xd44   :  { %v3059_v41 = vpop.eup %3058  ;;  %951 = vrot.lane.b32.xlu0 %v3057_v40, %s3272_s4 }
 0xd45   :  { %976 = vrot.lane.b32.xlu1 %v3059_v41, %s3272_s4 }
 0xdb6   :  { %v952_v42 = vpop.permute.xlu0 %951 }
 0xdb7   :  { %v954_v43 = vmul.f32 %v3053_v23, %v952_v42  ;;  %v977_v13 = vpop.permute.xlu1 %976 }
 0xdb8   :  { %v979_v44 = vmul.f32 %v3055_v19, %v977_v13 }
 0xdb9   :  { %981 = vrot.lane.b32.xlu0 %v954_v43, %s3273_s26 }
 0xdba   :  { %985 = vrot.lane.b32.xlu1 %v979_v44, %s3272_s4 }
 0xe2b   :  { %v3745_v30 = vpop.permute.xlu0 %981 }
 0xe2c   :  { %v3747_v45 = vpop.permute.xlu1 %985 }
 0xe2d   :  { %v988_v47 = vsel %vm68_vm0, %v3745_v30, %v3747_v45 }
 0xe2e   :  { %2546 = vmatmul.mubr.msk.f32.vlgmr.msra.gmra.mrb[22].mxu1 %vm323_vm2, %v988_v47 }
 0xe2f   :  { %2860 = vmatpush1.bf16.msra.mxu1 %v3449_v21  ;;  %1322 = vmatprep.mubr.f32.mxu1 %v3271_v0 }
 0xe30   :  { %2862 = vmatprep.subr.bf16.mxu1 %v3475_v28 }
 0xe33   :  { %2864 = vmatpush1.bf16.msra.mxu1 %v3495_v35 }
 0xe34   :  { %2866 = vmatprep.subr.bf16.mxu1 %v3508_v38 }
 0xe37   :  { %2868 = vmatpush1.bf16.msra.mxu1 %v3530_v46 }
 0xe38   :  { %2870 = vmatprep.subr.bf16.mxu1 %v3534_v48 }
 0xe3b   :  { %2872 = vmatpush1.bf16.msra.mxu1 %v3552_v53 }
 0xf01   :  { %v1058_v49 = vpop.f32.mrb[22].mxu1 }
 0xf02   :  { %v1063_v50 = vadd.f32 %v1058_v49, %v3620_v27  ;;  %v1060_v9 = vpop.f32.mrb[23].mxu1 }
 0xf03   :  { %v1088_v21 = vadd.f32 %v1060_v9, %v3610_v15 }
 0xf04   :  { %3060 = vtanh.f32 %v1063_v50  ;;  %v2547_v35 = vmul.f32 -1.442695, %v1063_v50 }
 0xf05   :  { %3062 = vtanh.f32 %v1088_v21  ;;  %v2548_v38 = vmul.f32 -1.442695, %v1088_v21 }
 0xf06   :  { %3064 = vpow2.f32 %v2547_v35 }
 0xf07   :  { %3066 = vpow2.f32 %v2548_v38 }
 0xf0e   :  { %v3061_v34 = vpop.eup %3060 }
 0xf0f   :  { %v3063_v28 = vpop.eup %3062  ;;  %1073 = vrot.lane.b32.xlu0 %v3061_v34, %s3272_s4 }
 0xf10   :  { %1098 = vrot.lane.b32.xlu1 %v3063_v28, %s3272_s4  ;;  %v3065_v46 = vpop.eup %3064 }
 0xf11   :  { %v3067_v48 = vpop.eup %3066  ;;  %v1067_v53 = vadd.f32 1.0, %v3065_v46 }
 0xf12   :  { %v1092_v52 = vadd.f32 1.0, %v3067_v48 }
 0xf13   :  { %3068 = vrcp.f32 %v1067_v53 }
 0xf14   :  { %3070 = vrcp.f32 %v1092_v52 }
 0xf1d   :  { %v3069_v27 = vpop.eup %3068 }
 0xf1e   :  { %v3071_v55 = vpop.eup %3070  ;;  %v1071_v60 = vmul.f32 %v3069_v27, %v948_v25 }
 0xf1f   :  { %v1096_v2 = vmul.f32 %v3071_v55, %v973_v39 }
 0xf81   :  { %v1074_v15 = vpop.permute.xlu0 %1073 }
 0xf82   :  { %v1076_v56 = vmul.f32 %v3069_v27, %v1074_v15  ;;  %v1099_v57 = vpop.permute.xlu1 %1098 }
 0xf83   :  { %v1101_v58 = vmul.f32 %v3071_v55, %v1099_v57 }
 0xf84   :  { %1078 = vrot.lane.b32.xlu0 %v1076_v56, %s3273_s26 }
 0xf85   :  { %1103 = vrot.lane.b32.xlu1 %v1101_v58, %s3273_s26 }
 0xff6   :  { %v1079_v1 = vpop.permute.xlu0 %1078 }
 0xff7   :  { %v1081_v4 = vadd.f32 %v1079_v1, %v1071_v60  ;;  %v1104_v7 = vpop.permute.xlu1 %1103 }
 0xff8   :  { %v1106_v8 = vadd.f32 %v1104_v7, %v1096_v2 }
 0xff9   :  { %3072 = vtanh.f32 %v1081_v4 }
 0xffa   :  { %3074 = vtanh.f32 %v1106_v8 }
0x1003   :  { %v3073_v12 = vpop.eup %3072 }
0x1004   :  { %v3075_v14 = vpop.eup %3074  ;;  %1084 = vrot.lane.b32.xlu0 %v3073_v12, %s3272_s4 }
0x1005   :  { %1109 = vrot.lane.b32.xlu1 %v3075_v14, %s3272_s4 }
0x1076   :  { %v1085_v16 = vpop.permute.xlu0 %1084 }
0x1077   :  { %v1087_v23 = vmul.f32 %v3069_v27, %v1085_v16  ;;  %v1110_v20 = vpop.permute.xlu1 %1109 }
0x1078   :  { %v1112_v19 = vmul.f32 %v3071_v55, %v1110_v20 }
0x1079   :  { %1114 = vrot.lane.b32.xlu0 %v1087_v23, %s3273_s26 }
0x107a   :  { %1118 = vrot.lane.b32.xlu1 %v1112_v19, %s3272_s4 }
0x10eb   :  { %v3771_v22 = vpop.permute.xlu0 %1114 }
0x10ec   :  { %v3773_v24 = vpop.permute.xlu1 %1118 }
0x10ed   :  { %v1121_v17 = vsel %vm68_vm0, %v3771_v22, %v3773_v24 }
0x10ee   :  { %2549 = vmatmul.mubr.msk.f32.vlgmr.msra.gmra.mrb[4].mxu0 %vm323_vm2, %v1121_v17  ;;  %v1396_v17 = vld [vmem:[#allocation8 + $0x8] sm:$0xff] }
0x10ef   :  { %1511 = vmatprep.mubr.f32.mxu0 %v3271_v0 }
0x11c1   :  { %v1191_v31 = vpop.f32.mrb[4].mxu0 }
0x11c2   :  { %v1196_v33 = vadd.f32 %v1191_v31, %v3624_v32  ;;  %v1193_v18 = vpop.f32.mrb[5].mxu0  ;;  %v1398_v31 = vld [vmem:[#allocation8 + $0x18] sm:$0xff] }
0x11c3   :  { %v1221_v25 = vadd.f32 %v1193_v18, %v3606_v11  ;;  %v2873_v18 = vpack.c.bf16 %v1398_v31, %v1396_v17 }
0x11c4   :  { %3076 = vtanh.f32 %v1196_v33  ;;  %v2550_v40 = vmul.f32 -1.442695, %v1196_v33  ;;  %v1395_v33 = vld [vmem:[#allocation8] sm:$0xff] }
0x11c5   :  { %3078 = vtanh.f32 %v1221_v25  ;;  %v2551_v41 = vmul.f32 -1.442695, %v1221_v25  ;;  %v1397_v25 = vld [vmem:[#allocation8 + $0x10] sm:$0xff]  ;;  %2874 = vmatprep.subr.bf16.mxu0 %v2873_v18 }
0x11c6   :  { %3080 = vpow2.f32 %v2550_v40  ;;  %v3274_v40 = vmov 0.0|0.0  }
0x11c7   :  { %3082 = vpow2.f32 %v2551_v41  ;;  %2889 = vmatprep.subr.bf16.mxu1 %v3274_v40  ;;  %v2875_v41 = vpack.c.bf16 %v1397_v25, %v1395_v33 }
0x11c9   :  { %2876 = vmatpush1.bf16.msra.mxu0 %v2875_v41 }
0x11ce   :  { %v3077_v36 = vpop.eup %3076 }
0x11cf   :  { %v3079_v39 = vpop.eup %3078  ;;  %1206 = vrot.lane.b32.xlu0 %v3077_v36, %s3272_s4  ;;  %v1400_v36 = vld [vmem:[#allocation8 + $0x28] sm:$0xff] }
0x11d0   :  { %1231 = vrot.lane.b32.xlu1 %v3079_v39, %s3272_s4  ;;  %v3081_v42 = vpop.eup %3080  ;;  %v1402_v39 = vld [vmem:[#allocation8 + $0x38] sm:$0xff] }
0x11d1   :  { %v3083_v43 = vpop.eup %3082  ;;  %v1200_v13 = vadd.f32 1.0, %v3081_v42  ;;  %v2877_v42 = vpack.c.bf16 %v1402_v39, %v1400_v36 }
0x11d2   :  { %v1225_v44 = vadd.f32 1.0, %v3083_v43  ;;  %v1399_v43 = vld [vmem:[#allocation8 + $0x20] sm:$0xff] }
0x11d3   :  { %3084 = vrcp.f32 %v1200_v13  ;;  %v1401_v13 = vld [vmem:[#allocation8 + $0x30] sm:$0xff]  ;;  %2878 = vmatprep.subr.bf16.mxu0 %v2877_v42 }
0x11d4   :  { %3086 = vrcp.f32 %v1225_v44  ;;  %v1404_v44 = vld [vmem:[#allocation8 + $0x48] sm:$0xff] }
0x11dd   :  { %v3085_v32 = vpop.eup %3084 }
0x11de   :  { %v3087_v47 = vpop.eup %3086  ;;  %v1204_v21 = vmul.f32 %v3085_v32, %v1081_v4 }
0x11df   :  { %v1229_v28 = vmul.f32 %v3087_v47, %v1106_v8 }
0x1241   :  { %v1207_v11 = vpop.permute.xlu0 %1206 }
0x1242   :  { %v1209_v49 = vmul.f32 %v3085_v32, %v1207_v11  ;;  %v1232_v50 = vpop.permute.xlu1 %1231  ;;  %v2879_v11 = vpack.c.bf16 %v1401_v13, %v1399_v43 }
0x1243   :  { %v1234_v9 = vmul.f32 %v3087_v47, %v1232_v50 }
0x1244   :  { %1211 = vrot.lane.b32.xlu0 %v1209_v49, %s3273_s26  ;;  %v1554_v49 = vld [vmem:[%s4046_s6 + $0x8] sm:$0xff]  ;;  %2880 = vmatpush1.bf16.msra.mxu0 %v2879_v11 }
0x1245   :  { %1236 = vrot.lane.b32.xlu1 %v1234_v9, %s3273_s26  ;;  %v1403_v9 = vld [vmem:[#allocation8 + $0x40] sm:$0xff] }
0x12b6   :  { %v1212_v34 = vpop.permute.xlu0 %1211 }
0x12b7   :  { %v3786_v35 = vadd.f32 %v1212_v34, %v1204_v21  ;;  %v1237_v38 = vpop.permute.xlu1 %1236  ;;  %v1405_v21 = vld [vmem:[#allocation8 + $0x50] sm:$0xff] }
0x12b8   :  { %v1239_v46 = vadd.f32 %v1237_v38, %v1229_v28  ;;  %v1408_v38 = vld [vmem:[#allocation8 + $0x68] sm:$0xff] }
0x12b9   :  { %3088 = vtanh.f32 %v3786_v35 }
0x12ba   :  { %3090 = vtanh.f32 %v1239_v46 }
0x12c3   :  { %v3089_v48 = vpop.eup %3088 }
0x12c4   :  { %v3091_v53 = vpop.eup %3090  ;;  %1217 = vrot.lane.b32.xlu0 %v3089_v48, %s3272_s4  ;;  %v2883_v48 = vpack.c.bf16 %v1405_v21, %v1403_v9 }
0x12c5   :  { %1242 = vrot.lane.b32.xlu1 %v3091_v53, %s3272_s4 }
0x1336   :  { %v1218_v52 = vpop.permute.xlu0 %1217 }
0x1337   :  { %v1220_v27 = vmul.f32 %v3085_v32, %v1218_v52  ;;  %v1243_v15 = vpop.permute.xlu1 %1242  ;;  %v1406_v32 = vld [vmem:[#allocation8 + $0x58] sm:$0xff]  ;;  %v1407_v52 = vld [vmem:[#allocation8 + $0x60] sm:$0xff] }
0x1338   :  { %v1245_v55 = vmul.f32 %v3087_v47, %v1243_v15  ;;  %v1553_v47 = vld [vmem:[%s4046_s6] sm:$0xff]  ;;  %v2881_v50 = vpack.c.bf16 %v1406_v32, %v1404_v44 }
0x1339   :  { %1247 = vrot.lane.b32.xlu0 %v1220_v27, %s3273_s26  ;;  %v3819_v34 = vpack.c.bf16 %v1554_v49, %v1553_v47  ;;  %v1409_v27 = vld [vmem:[#allocation8 + $0x70] sm:$0xff] }
0x133a   :  { %1251 = vrot.lane.b32.xlu1 %v1245_v55, %s3272_s4  ;;  %2882 = vmatprep.subr.bf16.mxu0 %v2881_v50  ;;  %v2887_v55 = vpack.c.bf16 %v1409_v27, %v1407_v52 }
0x133b   :  { %2884 = vmatpush1.bf16.msra.mxu0 %v2883_v48 }
0x13ab   :  { %v3793_v56 = vpop.permute.xlu0 %1247 }
0x13ac   :  { %v3795_v57 = vpop.permute.xlu1 %1251 }
0x13ad   :  { %v1254_v58 = vsel %vm68_vm0, %v3793_v56, %v3795_v57  ;;  %v1388_v17 = vsel %vm68_vm0, %v3665_v5, %v3795_v57  ;;  %v1390_v5 = vsel %vm68_vm0, %v3719_v51, %v3747_v45  ;;  %v1391_v57 = vsel %vm68_vm0, %v3745_v30, %v3721_v54 }
0x13ae   :  { %2552 = vmatmul.mubr.msk.f32.vlgmr.msra.gmra.mrb[24].mxu1 %vm323_vm2, %v1254_v58  ;;  %v1393_v51 = vsel %vm68_vm0, %v3793_v56, %v3667_v10 }
0x13af   :  { %2891 = vmatpush3.bf16.msra.mxu1 %v3819_v34  ;;  %2638 = vmatprep.mubr.msk.f32.mxu1 %vm3275_vm3, %v3271_v0 }
0x13b0   :  { %2892 = vmatprep.subr.bf16.mxu1 %v3274_v40 }
0x1481   :  { %v1324_v60 = vpop.f32.mrb[24].mxu1 }
0x1482   :  { %v3802_v1 = vadd.f32 %v1324_v60, %v3628_v37  ;;  %v1326_v2 = vpop.f32.mrb[25].mxu1  ;;  %v1555_v60 = vld [vmem:[%s4046_s6 + $0x10] sm:$0xff] }
0x1483   :  { %v1354_v4 = vadd.f32 %v1326_v2, %v3600_v6  ;;  %v1556_v2 = vld [vmem:[%s4046_s6 + $0x18] sm:$0xff] }
0x1484   :  { %v2553_v58 = vmul.f32 -1.442695, %v3802_v1 }
0x1485   :  { %3092 = vtanh.f32 %v1354_v4  ;;  %v2554_v8 = vmul.f32 -1.442695, %v1354_v4 }
0x1487   :  { %3094 = vpow2.f32 %v2554_v8 }
0x148f   :  { %v3093_v7 = vpop.eup %3092 }
0x1490   :  { %1364 = vrot.lane.b32.xlu0 %v3093_v7, %s3272_s4  ;;  %v3833_v7 = vpack.c.bf16 %v1556_v2, %v1555_v60 }
0x1491   :  { %v3095_v12 = vpop.eup %3094 }
0x1492   :  { %v1358_v14 = vadd.f32 1.0, %v3095_v12  ;;  %2894 = vmatpush3.bf16.msra.mxu1 %v3833_v7 }
0x1493   :  { %2931 = vmatprep.subr.bf16.mxu1 %v3274_v40 }
0x1494   :  { %3096 = vrcp.f32 %v1358_v14 }
0x1495   :  { %2639 = vmatmul.mubr.f32.vlgmr.msra.gmra.mrb[26].mxu1 %v3271_v0 }
0x1496   :  { %2933 = vmatpush3.bf16.msra.mxu1 %v3819_v34  ;;  %2715 = vmatprep.mubr.msk.f32.mxu1 %vm3275_vm3, %v3271_v0 }
0x1497   :  { %2934 = vmatprep.subr.bf16.mxu1 %v3274_v40 }
0x149a   :  { %2936 = vmatpush3.bf16.msra.mxu1 %v3833_v7 }
0x149b   :  { %2937 = vmatprep.subr.bf16.mxu1 %v3274_v40 }
0x149e   :  { %v3806_v16 = vpop.eup %3096 }
0x149f   :  { %v1362_v37 = vmul.f32 %v3806_v16, %v1239_v46  ;;  %v1410_v46 = vld [vmem:[#allocation8 + $0x78] sm:$0xff] }
0x14a0   :  { %v2885_v53 = vpack.c.bf16 %v1410_v46, %v1408_v38 }
0x14a2   :  { %2886 = vmatprep.subr.bf16.mxu0 %v2885_v53 }
0x14a3   :  { %2888 = vmatpush1.bf16.msra.mxu0 %v2887_v55 }
0x14a4   :  { %2895 = vmatprep.subr.bf16.mxu0 %v3274_v40 }
0x1502   :  { %v1365_v23 = vpop.permute.xlu0 %1364 }
0x1503   :  { %v1367_v20 = vmul.f32 %v3806_v16, %v1365_v23 }
0x1505   :  { %1369 = vrot.lane.b32.xlu1 %v1367_v20, %s3273_s26 }
0x1568   :  { %v1625_v54 = vpop.f32.mrb[26].mxu1 }
0x1569   :  { %v2640_v30 = vpop.f32.mrb[27].mxu1 }
0x1577   :  { %v1370_v19 = vpop.permute.xlu1 %1369 }
0x1578   :  { %v1372_v6 = vadd.f32 %v1370_v19, %v1362_v37 }
0x157a   :  { %3098 = vtanh.f32 %v1372_v6 }
0x157b   :  { %3100 = vtanh.f32 %v3802_v1 }
0x157c   :  { %3102 = vpow2.f32 %v2553_v58 }
0x1584   :  { %v3099_v28 = vpop.eup %3098 }
0x1585   :  { %1375 = vrot.lane.b32.xlu0 %v3099_v28, %s3272_s4  ;;  %v3101_v15 = vpop.eup %3100 }
0x1586   :  { %v3103_v4 = vpop.eup %3102 }
0x1587   :  { %v1333_v8 = vadd.f32 1.0, %v3103_v4 }
0x1589   :  { %1339 = vrot.lane.b32.xlu0 %v3101_v15, %s3272_s4  ;;  %3104 = vrcp.f32 %v1333_v8 }
0x1593   :  { %v3105_v14 = vpop.eup %3104 }
0x1594   :  { %v1337_v6 = vmul.f32 %v3105_v14, %v3786_v35 }
0x15f7   :  { %v1376_v1 = vpop.permute.xlu0 %1375 }
0x15f8   :  { %v1378_v12 = vmul.f32 %v3806_v16, %v1376_v1 }
0x15fa   :  { %1384 = vrot.lane.b32.xlu1 %v1378_v12, %s3272_s4 }
0x15fb   :  { %v1340_v23 = vpop.permute.xlu0 %1339 }
0x15fc   :  { %v1342_v20 = vmul.f32 %v3105_v14, %v1340_v23 }
0x15fe   :  { %1344 = vrot.lane.b32.xlu0 %v1342_v20, %s3273_s26 }
0x166c   :  { %v1385_v37 = vpop.permute.xlu1 %1384 }
0x166d   :  { %v1387_v19 = vsel %vm68_vm0, %v3638_v26, %v1385_v37  ;;  %v1389_v26 = vsel %vm68_vm0, %v3692_v59, %v3773_v24  ;;  %v1392_v59 = vsel %vm68_vm0, %v3771_v22, %v3694_v61  ;;  %v3893_v61 = vld [vmem:[%s4047_s7] sm:$0x3] }
0x166e   :  { %2555 = vmatmul.mubr.msk.f32.vlgmr.msra.gmra.mrb[6].mxu0 %vm323_vm2, %v1387_v19  ;;  %v3898_v22 = vrot.slane %v3893_v61, %v162_v3 }
0x166f   :  { %1516 = vmatprep.mubr.f32.mxu0 %v3271_v0  ;;  %2897 = vmatpush3.bf16.msra.mxu0 %v3819_v34 }
0x1670   :  { %v1345_v16 = vpop.permute.xlu0 %1344  ;;  %2898 = vmatprep.subr.bf16.mxu0 %v3274_v40 }
0x1671   :  { %v1347_v31 = vadd.f32 %v1345_v16, %v1337_v6 }
0x1672   :  { %2556 = vmatmul.mubr.msk.f32.gmra.mrb[8].mxu0 %vm323_vm2, %v1388_v17 }
0x1673   :  { %3106 = vtanh.f32 %v1347_v31  ;;  %1521 = vmatprep.mubr.f32.mxu0 %v3271_v0  ;;  %2900 = vmatpush3.bf16.msra.mxu0 %v3833_v7 }
0x1674   :  { %2901 = vmatprep.subr.bf16.mxu0 %v3274_v40 }
0x1676   :  { %2557 = vmatmul.mubr.msk.f32.gmra.mrb[10].mxu0 %vm323_vm2, %v1389_v26 }
0x1677   :  { %1526 = vmatprep.mubr.f32.mxu0 %v3271_v0 }
0x167a   :  { %2558 = vmatmul.mubr.msk.f32.gmra.mrb[12].mxu0 %vm323_vm2, %v1390_v5 }
0x167b   :  { %1531 = vmatprep.mubr.f32.mxu0 %v3271_v0 }
0x167d   :  { %v3107_v35 = vpop.eup %3106 }
0x167e   :  { %2559 = vmatmul.mubr.msk.f32.gmra.mrb[14].mxu0 %vm323_vm2, %v1391_v57  ;;  %1350 = vrot.lane.b32.xlu0 %v3107_v35, %s3272_s4 }
0x167f   :  { %1536 = vmatprep.mubr.f32.mxu0 %v3271_v0 }
0x1682   :  { %2560 = vmatmul.mubr.msk.f32.gmra.mrb[16].mxu0 %vm323_vm2, %v1392_v59 }
0x1683   :  { %1541 = vmatprep.mubr.f32.mxu0 %v3271_v0 }
0x1686   :  { %2561 = vmatmul.mubr.msk.f32.gmra.mrb[18].mxu0 %vm323_vm2, %v1393_v51 }
0x1687   :  { %1546 = vmatprep.mubr.f32.mxu0 %v3271_v0 }
0x16f0   :  { %v1351_v45 = vpop.permute.xlu0 %1350 }
0x16f1   :  { %v1353_v24 = vmul.f32 %v3105_v14, %v1351_v45 }
0x16f3   :  { %1380 = vrot.lane.b32.xlu0 %v1353_v24, %s3273_s26 }
0x1741   :  { %v1513_v10 = vpop.f32.mrb[6].mxu0 }
0x1742   :  { %v1514_v56 = vadd.f32 %v1513_v10, %v3898_v22  ;;  %v1515_v33 = vpop.f32.mrb[7].mxu0 }
0x1744   :  { %v1629_v18 = vadd.f32 %v1625_v54, %v1514_v56 }
0x1746   :  { %3108 = vtanh.f32 %v1629_v18  ;;  %v2563_v3 = vmul.f32 -1.442695, %v1629_v18 }
0x1748   :  { %3110 = vpow2.f32 %v2563_v3 }
0x1750   :  { %v3109_v25 = vpop.eup %3108 }
0x1751   :  { %1639 = vrot.lane.b32.xlu1 %v3109_v25, %s3272_s4 }
0x1752   :  { %v3111_v41 = vpop.eup %3110 }
0x1753   :  { %v1633_v42 = vadd.f32 1.0, %v3111_v41 }
0x1755   :  { %3112 = vrcp.f32 %v1633_v42 }
0x175f   :  { %v3113_v43 = vpop.eup %3112 }
0x1760   :  { %v1637_v32 = vmul.f32 0.0, %v3113_v43 }
0x1765   :  { %v1381_v36 = vpop.permute.xlu0 %1380 }
0x1766   :  { %v1394_v39 = vsel %vm68_vm0, %v1381_v36, %v3640_v29 }
0x1767   :  { %2562 = vmatmul.mubr.msk.f32.gmra.mrb[20].mxu0 %vm323_vm2, %v1394_v39 }
0x1768   :  { %2649 = vmatprep.mubr.msk.f32.mxu0 %vm3275_vm3, %v3271_v0 }
0x17c3   :  { %v1640_v13 = vpop.permute.xlu1 %1639 }
0x17c4   :  { %v1642_v44 = vmul.f32 %v3113_v43, %v1640_v13 }
0x17c6   :  { %1644 = vrot.lane.b32.xlu1 %v1642_v44, %s3273_s26 }
0x1838   :  { %v1645_v11 = vpop.permute.xlu1 %1644 }
0x1839   :  { %v1647_v47 = vadd.f32 %v1645_v11, %v1637_v32 }
0x183a   :  { %v3908_v49 = vpop.f32.mrb[20].mxu0 }
0x183b   :  { %3114 = vtanh.f32 %v1647_v47  ;;  %v3910_v29 = vpop.f32.mrb[21].mxu0 }
0x1845   :  { %v3115_v50 = vpop.eup %3114 }
0x1846   :  { %1650 = vrot.lane.b32.xlu1 %v3115_v50, %s3272_s4 }
0x18b8   :  { %v1651_v9 = vpop.permute.xlu1 %1650 }
0x18b9   :  { %v1653_v21 = vmul.f32 %v3113_v43, %v1651_v9 }
0x18bb   :  { %1655 = vrot.lane.b32.xlu1 %v1653_v21, %s3273_s26 }
0x192d   :  { %v1656_v28 = vpop.permute.xlu1 %1655 }
0x192e   :  { %2650 = vmatmul.mubr.msk.f32.vlgmr.msra.gmra.mrb[8].mxu0 %vm68_vm0, %v1656_v28 }
0x192f   :  { %2903 = vmatpush3.bf16.msra.mxu0 %v3819_v34  ;;  %2660 = vmatprep.mubr.msk.f32.mxu0 %vm3275_vm3, %v3271_v0 }
0x1930   :  { %2904 = vmatprep.subr.bf16.mxu0 %v3274_v40 }
0x1933   :  { %2906 = vmatpush3.bf16.msra.mxu0 %v3833_v7 }
0x1934   :  { %2907 = vmatprep.subr.bf16.mxu0 %v3274_v40 }
0x1a01   :  { %v1725_v38 = vpop.f32.mrb[8].mxu0 }
0x1a02   :  { %v2951_v46 = vadd.f32 %v1725_v38, %v3898_v22  ;;  %v2651_v48 = vpop.f32.mrb[9].mxu0 }
0x1a04   :  { %3116 = vtanh.f32 %v2951_v46  ;;  %v2565_v52 = vmul.f32 -1.442695, %v2951_v46 }
0x1a06   :  { %3118 = vpow2.f32 %v2565_v52 }
0x1a0e   :  { %v3117_v53 = vpop.eup %3116 }
0x1a0f   :  { %1739 = vrot.lane.b32.xlu0 %v3117_v53, %s3272_s4 }
0x1a10   :  { %v3119_v27 = vpop.eup %3118 }
0x1a11   :  { %v1733_v15 = vadd.f32 1.0, %v3119_v27 }
0x1a13   :  { %3120 = vrcp.f32 %v1733_v15 }
0x1a1d   :  { %v3121_v55 = vpop.eup %3120 }
0x1a1e   :  { %v1737_v2 = vmul.f32 %v3121_v55, %v1647_v47 }
0x1a81   :  { %v1740_v58 = vpop.permute.xlu0 %1739 }
0x1a82   :  { %v1742_v60 = vmul.f32 %v3121_v55, %v1740_v58 }
0x1a84   :  { %1744 = vrot.lane.b32.xlu1 %v1742_v60, %s3273_s26 }
0x1af6   :  { %v1745_v4 = vpop.permute.xlu1 %1744 }
0x1af7   :  { %v1747_v8 = vadd.f32 %v1745_v4, %v1737_v2 }
0x1af9   :  { %3122 = vtanh.f32 %v1747_v8 }
0x1b03   :  { %v3123_v1 = vpop.eup %3122 }
0x1b04   :  { %1750 = vrot.lane.b32.xlu0 %v3123_v1, %s3272_s4 }
0x1b76   :  { %v1751_v12 = vpop.permute.xlu0 %1750 }
0x1b77   :  { %v1753_v14 = vmul.f32 %v3121_v55, %v1751_v12 }
0x1b79   :  { %1755 = vrot.lane.b32.xlu1 %v1753_v14, %s3273_s26 }
0x1beb   :  { %v1756_v23 = vpop.permute.xlu1 %1755 }
0x1bec   :  { %2661 = vmatmul.mubr.msk.f32.vlgmr.msra.gmra.mrb[10].mxu0 %vm68_vm0, %v1756_v23 }
0x1bed   :  { %2909 = vmatpush3.bf16.msra.mxu0 %v3819_v34  ;;  %2671 = vmatprep.mubr.msk.f32.mxu0 %vm3275_vm3, %v3271_v0 }
0x1bee   :  { %2910 = vmatprep.subr.bf16.mxu0 %v3274_v40 }
0x1bf1   :  { %2912 = vmatpush3.bf16.msra.mxu0 %v3833_v7 }
0x1bf2   :  { %2913 = vmatprep.subr.bf16.mxu0 %v3274_v40 }
0x1cbf   :  { %v1825_v20 = vpop.f32.mrb[10].mxu0 }
0x1cc0   :  { %v2952_v37 = vadd.f32 %v1825_v20, %v3898_v22  ;;  %v2662_v19 = vpop.f32.mrb[11].mxu0 }
0x1cc2   :  { %3124 = vtanh.f32 %v2952_v37  ;;  %v2567_v16 = vmul.f32 -1.442695, %v2952_v37 }
0x1cc4   :  { %3126 = vpow2.f32 %v2567_v16 }
0x1ccc   :  { %v3125_v6 = vpop.eup %3124 }
0x1ccd   :  { %1839 = vrot.lane.b32.xlu0 %v3125_v6, %s3272_s4 }
0x1cce   :  { %v3127_v17 = vpop.eup %3126 }
0x1ccf   :  { %v1833_v31 = vadd.f32 1.0, %v3127_v17 }
0x1cd1   :  { %3128 = vrcp.f32 %v1833_v31 }
0x1cdb   :  { %v3129_v26 = vpop.eup %3128 }
0x1cdc   :  { %v1837_v57 = vmul.f32 %v3129_v26, %v1747_v8 }
0x1d3f   :  { %v1840_v5 = vpop.permute.xlu0 %1839 }
0x1d40   :  { %v1842_v35 = vmul.f32 %v3129_v26, %v1840_v5 }
0x1d42   :  { %1844 = vrot.lane.b32.xlu1 %v1842_v35, %s3273_s26 }
0x1db4   :  { %v1845_v59 = vpop.permute.xlu1 %1844 }
0x1db5   :  { %v1847_v51 = vadd.f32 %v1845_v59, %v1837_v57 }
0x1db7   :  { %3130 = vtanh.f32 %v1847_v51 }
0x1dc1   :  { %v3131_v54 = vpop.eup %3130 }
0x1dc2   :  { %1850 = vrot.lane.b32.xlu0 %v3131_v54, %s3272_s4 }
0x1e34   :  { %v1851_v30 = vpop.permute.xlu0 %1850 }
0x1e35   :  { %v1853_v45 = vmul.f32 %v3129_v26, %v1851_v30 }
0x1e37   :  { %1855 = vrot.lane.b32.xlu1 %v1853_v45, %s3273_s26 }
0x1ea9   :  { %v1856_v24 = vpop.permute.xlu1 %1855 }
0x1eaa   :  { %2672 = vmatmul.mubr.msk.f32.vlgmr.msra.gmra.mrb[12].mxu0 %vm68_vm0, %v1856_v24 }
0x1eab   :  { %2915 = vmatpush3.bf16.msra.mxu0 %v3819_v34  ;;  %2682 = vmatprep.mubr.msk.f32.mxu0 %vm3275_vm3, %v3271_v0 }
0x1eac   :  { %2916 = vmatprep.subr.bf16.mxu0 %v3274_v40 }
0x1eaf   :  { %2918 = vmatpush3.bf16.msra.mxu0 %v3833_v7 }
0x1eb0   :  { %2919 = vmatprep.subr.bf16.mxu0 %v3274_v40 }
0x1f7d   :  { %v1925_v10 = vpop.f32.mrb[12].mxu0 }
0x1f7e   :  { %v2953_v56 = vadd.f32 %v1925_v10, %v3898_v22  ;;  %v2673_v33 = vpop.f32.mrb[13].mxu0 }
0x1f80   :  { %3132 = vtanh.f32 %v2953_v56  ;;  %v2569_v25 = vmul.f32 -1.442695, %v2953_v56 }
0x1f82   :  { %3134 = vpow2.f32 %v2569_v25 }
0x1f8a   :  { %v3133_v18 = vpop.eup %3132 }
0x1f8b   :  { %1939 = vrot.lane.b32.xlu0 %v3133_v18, %s3272_s4 }
0x1f8c   :  { %v3135_v36 = vpop.eup %3134 }
0x1f8d   :  { %v1933_v39 = vadd.f32 1.0, %v3135_v36 }
0x1f8f   :  { %3136 = vrcp.f32 %v1933_v39 }
0x1f99   :  { %v3137_v3 = vpop.eup %3136 }
0x1f9a   :  { %v1937_v43 = vmul.f32 %v3137_v3, %v1847_v51 }
0x1ffd   :  { %v1940_v41 = vpop.permute.xlu0 %1939 }
0x1ffe   :  { %v1942_v42 = vmul.f32 %v3137_v3, %v1940_v41 }
0x2000   :  { %1944 = vrot.lane.b32.xlu1 %v1942_v42, %s3273_s26  ;;  %v1420_v42 = vrot.slane %v3893_v61, %v166_v63 }
0x2072   :  { %v1945_v13 = vpop.permute.xlu1 %1944 }
0x2073   :  { %v1947_v44 = vadd.f32 %v1945_v13, %v1937_v43  ;;  %v1551_v43 = vadd.f32 %v3910_v29, %v1420_v42 }
0x2075   :  { %3138 = vtanh.f32 %v1947_v44 }
0x207f   :  { %v3139_v32 = vpop.eup %3138 }
0x2080   :  { %1950 = vrot.lane.b32.xlu0 %v3139_v32, %s3272_s4 }
0x20f2   :  { %v1951_v11 = vpop.permute.xlu0 %1950 }
0x20f3   :  { %v1953_v47 = vmul.f32 %v3137_v3, %v1951_v11  ;;  %v2578_v11 = vmul.f32 -1.442695, %v1551_v43 }
0x20f5   :  { %1955 = vrot.lane.b32.xlu1 %v1953_v47, %s3273_s26 }
0x2167   :  { %v1956_v50 = vpop.permute.xlu1 %1955 }
0x2168   :  { %2683 = vmatmul.mubr.msk.f32.vlgmr.msra.gmra.mrb[14].mxu0 %vm68_vm0, %v1956_v50 }
0x2169   :  { %2921 = vmatpush3.bf16.msra.mxu0 %v3819_v34  ;;  %2693 = vmatprep.mubr.msk.f32.mxu0 %vm3275_vm3, %v3271_v0 }
0x216a   :  { %2922 = vmatprep.subr.bf16.mxu0 %v3274_v40 }
0x216d   :  { %2924 = vmatpush3.bf16.msra.mxu0 %v3833_v7 }
0x216e   :  { %2925 = vmatprep.subr.bf16.mxu0 %v3274_v40 }
0x223b   :  { %v2025_v9 = vpop.f32.mrb[14].mxu0 }
0x223c   :  { %v2954_v21 = vadd.f32 %v2025_v9, %v3898_v22  ;;  %v2684_v28 = vpop.f32.mrb[15].mxu0 }
0x223e   :  { %3140 = vtanh.f32 %v2954_v21  ;;  %v2571_v46 = vmul.f32 -1.442695, %v2954_v21 }
0x2240   :  { %3142 = vpow2.f32 %v2571_v46  ;;  %v1549_v46 = vadd.f32 %v3908_v49, %v3898_v22 }
0x2248   :  { %v3141_v38 = vpop.eup %3140 }
0x2249   :  { %2039 = vrot.lane.b32.xlu0 %v3141_v38, %s3272_s4 }
0x224a   :  { %v3143_v48 = vpop.eup %3142 }
0x224b   :  { %v2033_v53 = vadd.f32 1.0, %v3143_v48 }
0x224d   :  { %3144 = vrcp.f32 %v2033_v53 }
0x2257   :  { %v3145_v52 = vpop.eup %3144 }
0x2258   :  { %v2037_v55 = vmul.f32 %v3145_v52, %v1947_v44 }
0x22bb   :  { %v2040_v27 = vpop.permute.xlu0 %2039 }
0x22bc   :  { %v2042_v15 = vmul.f32 %v3145_v52, %v2040_v27 }
0x22be   :  { %2044 = vrot.lane.b32.xlu1 %v2042_v15, %s3273_s26 }
0x2330   :  { %v2045_v58 = vpop.permute.xlu1 %2044 }
0x2331   :  { %v2047_v60 = vadd.f32 %v2045_v58, %v2037_v55 }
0x2333   :  { %3146 = vtanh.f32 %v2047_v60 }
0x233d   :  { %v3147_v2 = vpop.eup %3146 }
0x233e   :  { %2050 = vrot.lane.b32.xlu0 %v3147_v2, %s3272_s4 }
0x23b0   :  { %v2051_v4 = vpop.permute.xlu0 %2050 }
0x23b1   :  { %v2053_v8 = vmul.f32 %v3145_v52, %v2051_v4 }
0x23b3   :  { %2055 = vrot.lane.b32.xlu1 %v2053_v8, %s3273_s26 }
0x2425   :  { %v2056_v1 = vpop.permute.xlu1 %2055 }
0x2426   :  { %2694 = vmatmul.mubr.msk.f32.vlgmr.msra.gmra.mrb[16].mxu0 %vm68_vm0, %v2056_v1 }
0x2427   :  { %2927 = vmatpush3.bf16.msra.mxu0 %v3819_v34  ;;  %2704 = vmatprep.mubr.msk.f32.mxu0 %vm3275_vm3, %v3271_v0 }
0x2428   :  { %2928 = vmatprep.subr.bf16.mxu0 %v3274_v40 }
0x242b   :  { %2930 = vmatpush3.bf16.msra.mxu0 %v3833_v7 }
0x24f9   :  { %v2125_v12 = vpop.f32.mrb[16].mxu0 }
0x24fa   :  { %v2955_v14 = vadd.f32 %v2125_v12, %v3898_v22  ;;  %v2695_v23 = vpop.f32.mrb[17].mxu0  ;;  %v2387_v12 = vld [vmem:[%s4048_s8] sm:$0xff] }
0x24fb   :  { %v2389_v23 = vld [vmem:[%s4048_s8 + $0x10] sm:$0xff] }
0x24fc   :  { %3148 = vtanh.f32 %v2955_v14  ;;  %v2573_v37 = vmul.f32 -1.442695, %v2955_v14  ;;  %v2388_v14 = vld [vmem:[%s4048_s8 + $0x8] sm:$0xff] }
0x24fe   :  { %3150 = vpow2.f32 %v2573_v37  ;;  %v2390_v37 = vld [vmem:[%s4048_s8 + $0x18] sm:$0xff] }
0x2506   :  { %v3149_v20 = vpop.eup %3148 }
0x2507   :  { %2139 = vrot.lane.b32.xlu0 %v3149_v20, %s3272_s4  ;;  %v2938_v20 = vpack.c.bf16 %v2388_v14, %v2387_v12 }
0x2508   :  { %v3151_v19 = vpop.eup %3150 }
0x2509   :  { %v2133_v6 = vadd.f32 1.0, %v3151_v19  ;;  %v2941_v19 = vpack.c.bf16 %v2390_v37, %v2389_v23 }
0x250b   :  { %3152 = vrcp.f32 %v2133_v6  ;;  %v2391_v6 = vld [vmem:[%s4048_s8 + $0x20] sm:$0xff] }
0x2515   :  { %v3153_v34 = vpop.eup %3152 }
0x2516   :  { %v2137_v31 = vmul.f32 %v3153_v34, %v2047_v60 }
0x2579   :  { %v2140_v16 = vpop.permute.xlu0 %2139 }
0x257a   :  { %v2142_v17 = vmul.f32 %v3153_v34, %v2140_v16 }
0x257c   :  { %2144 = vrot.lane.b32.xlu1 %v2142_v17, %s3273_s26  ;;  %v2393_v17 = vld [vmem:[%s4048_s8 + $0x30] sm:$0xff] }
0x25ee   :  { %v2145_v7 = vpop.permute.xlu1 %2144 }
0x25ef   :  { %v2147_v26 = vadd.f32 %v2145_v7, %v2137_v31  ;;  %v2394_v31 = vld [vmem:[%s4048_s8 + $0x38] sm:$0xff] }
0x25f1   :  { %3154 = vtanh.f32 %v2147_v26 }
0x25fb   :  { %v3155_v5 = vpop.eup %3154 }
0x25fc   :  { %2150 = vrot.lane.b32.xlu0 %v3155_v5, %s3272_s4 }
0x266e   :  { %v2151_v35 = vpop.permute.xlu0 %2150 }
0x266f   :  { %v2153_v57 = vmul.f32 %v3153_v34, %v2151_v35  ;;  %v2392_v34 = vld [vmem:[%s4048_s8 + $0x28] sm:$0xff] }
0x2670   :  { %v2944_v16 = vpack.c.bf16 %v2392_v34, %v2391_v6 }
0x2671   :  { %2155 = vrot.lane.b32.xlu1 %v2153_v57, %s3273_s26 }
0x26e3   :  { %v2156_v59 = vpop.permute.xlu1 %2155 }
0x26e4   :  { %2705 = vmatmul.mubr.msk.f32.vlgmr.msra.gmra.mrb[18].mxu0 %vm68_vm0, %v2156_v59 }
0x27b7   :  { %v2225_v51 = vpop.f32.mrb[18].mxu0 }
0x27b8   :  { %v2956_v54 = vadd.f32 %v2225_v51, %v3898_v22  ;;  %v2706_v30 = vpop.f32.mrb[19].mxu0 }
0x27ba   :  { %3156 = vtanh.f32 %v2956_v54  ;;  %v2575_v24 = vmul.f32 -1.442695, %v2956_v54  ;;  %v2579_v54 = vld [vmem:[%s4049_s9] ss:$0 sm:$0xff] }
0x27bc   :  { %3158 = vpow2.f32 %v2575_v24 }
0x27c4   :  { %v3157_v45 = vpop.eup %3156 }
0x27c5   :  { %2239 = vrot.lane.b32.xlu0 %v3157_v45, %s3272_s4 }
0x27c6   :  { %v3159_v10 = vpop.eup %3158 }
0x27c7   :  { %v2233_v56 = vadd.f32 1.0, %v3159_v10 }
0x27c9   :  { %3160 = vrcp.f32 %v2233_v56 }
0x27d3   :  { %v3161_v33 = vpop.eup %3160 }
0x27d4   :  { %v2237_v36 = vmul.f32 %v3161_v33, %v2147_v26  ;;  %v2947_v26 = vpack.c.bf16 %v2394_v31, %v2393_v17 }
0x2837   :  { %v2240_v18 = vpop.permute.xlu0 %2239 }
0x2838   :  { %v2242_v25 = vmul.f32 %v3161_v33, %v2240_v18 }
0x283a   :  { %2244 = vrot.lane.b32.xlu1 %v2242_v25, %s3273_s26 }
0x28ac   :  { %v2245_v39 = vpop.permute.xlu1 %2244 }
0x28ad   :  { %v2247_v3 = vadd.f32 %v2245_v39, %v2237_v36 }
0x28af   :  { %3162 = vtanh.f32 %v2247_v3 }
0x28b0   :  { %3164 = vtanh.f32 %v1551_v43 }
0x28b1   :  { %3166 = vpow2.f32 %v2578_v11 }
0x28b9   :  { %v3163_v41 = vpop.eup %3162 }
0x28ba   :  { %2250 = vrot.lane.b32.xlu0 %v3163_v41, %s3272_s4  ;;  %v3165_v32 = vpop.eup %3164 }
0x28bb   :  { %v3167_v47 = vpop.eup %3166 }
0x28bc   :  { %v2357_v50 = vadd.f32 1.0, %v3167_v47 }
0x28be   :  { %3168 = vrcp.f32 %v2357_v50 }
0x28c8   :  { %v3169_v62 = vpop.eup %3168 }
0x28c9   :  { %v2361_v29 = vmul.f32 0.0, %v3169_v62 }
0x292c   :  { %v2251_v13 = vpop.permute.xlu0 %2250 }
0x292d   :  { %v2253_v44 = vmul.f32 %v3161_v33, %v2251_v13 }
0x292f   :  { %2255 = vrot.lane.b32.xlu1 %v2253_v44, %s3273_s26 }
0x2933   :  { %2363 = vrot.lane.b32.xlu1 %v3165_v32, %s3272_s4 }
0x29a1   :  { %v2256_v9 = vpop.permute.xlu1 %2255 }
0x29a2   :  { %2716 = vmatmul.mubr.msk.f32.vlgmr.msra.gmra.mrb[28].mxu1 %vm68_vm0, %v2256_v9 }
0x29a3   :  { %2734 = vmatprep.mubr.msk.f32.mxu1 %vm3275_vm3, %v3271_v0  ;;  %2939 = vmatpush3.bf16.msra.mxu1 %v2938_v20 }
0x29a4   :  { %2940 = vmatprep.subr.bf16.mxu1 %v3274_v40 }
0x29a5   :  { %v2364_v63 = vpop.permute.xlu1 %2363 }
0x29a6   :  { %v2366_v61 = vmul.f32 %v3169_v62, %v2364_v63 }
0x29a7   :  { %2942 = vmatpush3.bf16.msra.mxu1 %v2941_v19 }
0x29a8   :  { %2368 = vrot.lane.b32.xlu1 %v2366_v61, %s3273_s26  ;;  %2943 = vmatprep.subr.bf16.mxu1 %v3274_v40 }
0x29ab   :  { %2945 = vmatpush3.bf16.msra.mxu1 %v2944_v16 }
0x29ac   :  { %2946 = vmatprep.subr.bf16.mxu1 %v3274_v40 }
0x29af   :  { %2948 = vmatpush3.bf16.msra.mxu1 %v2947_v26 }
0x2a1a   :  { %v2369_v21 = vpop.permute.xlu1 %2368 }
0x2a1b   :  { %v2371_v28 = vadd.f32 %v2369_v21, %v2361_v29 }
0x2a1d   :  { %3170 = vtanh.f32 %v2371_v28 }
0x2a27   :  { %v3171_v38 = vpop.eup %3170 }
0x2a28   :  { %2374 = vrot.lane.b32.xlu1 %v3171_v38, %s3272_s4 }
0x2a75   :  { %v2325_v48 = vpop.f32.mrb[28].mxu1 }
0x2a76   :  { %v2329_v53 = vadd.f32 %v2325_v48, %v1549_v46  ;;  %v2717_v52 = vpop.f32.mrb[29].mxu1 }
0x2a78   :  { %3172 = vtanh.f32 %v2329_v53  ;;  %v2577_v55 = vmul.f32 -1.442695, %v2329_v53 }
0x2a7a   :  { %3174 = vpow2.f32 %v2577_v55 }
0x2a82   :  { %v3173_v0 = vpop.eup %3172 }
0x2a83   :  { %2339 = vrot.lane.b32.xlu0 %v3173_v0, %s3272_s4 }
0x2a84   :  { %v3175_v58 = vpop.eup %3174 }
0x2a85   :  { %v2333_v60 = vadd.f32 1.0, %v3175_v58 }
0x2a87   :  { %3176 = vrcp.f32 %v2333_v60 }
0x2a91   :  { %v3177_v2 = vpop.eup %3176 }
0x2a92   :  { %v2337_v22 = vmul.f32 %v3177_v2, %v2247_v3 }
0x2a9a   :  { %v2375_v27 = vpop.permute.xlu1 %2374 }
0x2a9b   :  { %v2377_v15 = vmul.f32 %v3169_v62, %v2375_v27 }
0x2a9d   :  { %2383 = vrot.lane.b32.xlu1 %v2377_v15, %s3272_s4 }
0x2af5   :  { %v2340_v4 = vpop.permute.xlu0 %2339 }
0x2af6   :  { %v2342_v8 = vmul.f32 %v3177_v2, %v2340_v4 }
0x2af8   :  { %2344 = vrot.lane.b32.xlu0 %v2342_v8, %s3273_s26 }
0x2b0f   :  { %v2384_v57 = vpop.permute.xlu1 %2383 }
0x2b6a   :  { %v2345_v49 = vpop.permute.xlu0 %2344 }
0x2b6b   :  { %v2347_v1 = vadd.f32 %v2345_v49, %v2337_v22 }
0x2b6d   :  { %3178 = vtanh.f32 %v2347_v1 }
0x2b77   :  { %v3179_v7 = vpop.eup %3178 }
0x2b78   :  { %2350 = vrot.lane.b32.xlu0 %v3179_v7, %s3272_s4  ;;  %s3276_s4 = smov [#allocation10]  }
0x2b79   :  { %s2483_s0 = sshll.u32 %s3276_s4, 4  ;;  %s2484_s0 = int_to_ptr.vmem [resolvable:$true] %s2483_s0 }
0x2b7a   :  { %s3236_s27 = scalar_lea.vmem %s2484_s0, 32  ;;  %p3241_p8 = scmp.lt.s32.totalorder %s2484_s0, %s2484_s0 }
0x2b7b   :  { %p3237_p7 = scmp.ne.s32.totalorder %s2484_s0, %s3236_s27  ;;  %p3242_p9 = scmp.lt.s32.totalorder %s3236_s27, %s3236_s27 }
0x2b7d   :  { %p3243_p10 = por %p3242_p9, %p3241_p8 }
0x2b7f   :  { %p3244_p11 = pnand %p3243_p10, %p3237_p7 }
0x2bea   :  { %v2351_v5 = vpop.permute.xlu0 %2350 }
0x2beb   :  { %v2353_v35 = vmul.f32 %v3177_v2, %v2351_v5 }
0x2bed   :  { %2379 = vrot.lane.b32.xlu0 %v2353_v35, %s3273_s26 }
0x2c5f   :  { %v2380_v59 = vpop.permute.xlu0 %2379 }
0x2c60   :  { %v2386_v51 = vsel %vm68_vm0, %v2380_v59, %v2384_v57 }
0x2c61   :  { %2735 = vmatmul.mubr.msk.f32.vlgmr.msra.gmra.mrb[30].mxu1 %vm323_vm2, %v2386_v51 }
0x2d34   :  { %v2471_v30 = vpop.f32.mrb[30].mxu1 }
0x2d35   :  { %v2472_v40 = vadd.f32 %v2579_v54, %v2471_v30  ;;  %v2736_v45 = vpop.f32.mrb[31].mxu1 }
0x2d37   :  { %2476 = vst.msk [vmem:[#allocation10] sm:$0x3] %vm2475_vm4, %v2472_v40 }
0x2d38   :  { %3247 = shalt.err (!%p3244_p11)
}
0x2d39   :  { %s4053_s12 = sld [smem:[#allocation15_spill]] }
0x2d3f   :  { %s3248_s16 = scalar_lea.hbm %s4053_s12, 32 }
0x2d40   :  { %p3249_p12 = scmp.ne.s32.totalorder %s4053_s12, %s3248_s16  ;;  %p3252_p13 = scmp.lt.u32.totalorder %s3248_s16, %s4053_s12 }
0x2d42   :  { %p3254_p0 = pnand %p3252_p13, %p3249_p12 }
0x2d44   :  { %3257 = shalt.err (!%p3254_p0)
}
0x2d45   :  { %2486 = dma.vmem_to_hbm [thread:$0]  %s2484_s0, 32, %s4053_s12, [#allocation7]  }
0x2d46   :  { %3264 = dma.done.wait [#allocation7], 32  }
0x2d47   :  { %3265 = vsyncadd [#allocation7], 4294967264 }
0x2d48   :  { %2490 = vsyncpa [#allocation6], 1 }
0x2d49   :  { %2491 = vsyncpa [#allocation9], 1 }
0x2d4a   :  { %2492 = vsyncpa [#allocation7], 1 }

</bundles_post_ra>
